<compile_context>
chip_gen: v6e
topology: v6e:2x2x1
jax: 0.10.0
libtpu: 0.0.40
codegen_flags: <defaults>
</compile_context>

<pallas_src>
import math
import functools

import jax
import jax.numpy as jnp
from jax.experimental import pallas as pl
from jax.experimental.pallas import tpu as pltpu


def _vit_self_attention_kernel(x_ref, w_ref, b_ref, o_ref, *,
                               heads_per_group: int, head_dim: int,
                               compute_dtype):
    """One grid step = (head group, block of batch elements).

    x_ref: (Bt, S, H)       hidden_states tile (f32, cast in-VMEM)
    w_ref: (1, H, 3*dg)     fused [Wq*scale | Wk | Wv] columns for this group
    b_ref: (1, 1, 3*dg)     fused [bq*scale | bk | bv] bias (f32)
    o_ref: (Bt, S, dg)      context_layer columns for this head group
    """
    Bt, S, H = x_ref.shape
    hg, d = heads_per_group, head_dim
    dg = hg * d
    exact = jnp.dtype(compute_dtype) == jnp.dtype(jnp.float32)

    # One wide fused QKV GEMM over Bt*S rows, f32 accumulation on the MXU.
    x = x_ref[...].reshape(Bt * S, H).astype(compute_dtype)
    w = w_ref[0]                                              # (H, 3*dg)
    b = b_ref[0]                                              # (1, 3*dg) f32
    qkv = jnp.dot(x, w, preferred_element_type=jnp.float32) + b   # (Bt*S, 3*dg)
    # NOTE: 1/sqrt(head_dim) is already folded into Wq / bq host-side.

    def to_heads(t):                                          # (Bt*S, dg) -> (Bt*hg, S, d)
        t = t.reshape(Bt, S, hg, d).transpose(0, 2, 1, 3)
        return t.reshape(Bt * hg, S, d)

    # Cast BEFORE the head-split relayout (halves moved bytes when bf16).
    q = to_heads(qkv[:, :dg].astype(compute_dtype))
    k = to_heads(qkv[:, dg:2 * dg].astype(compute_dtype))
    v = to_heads(qkv[:, 2 * dg:].astype(compute_dtype))

    # Batched-head scores, f32 accumulation.
    s = jnp.einsum("bqd,bkd->bqk", q, k,
                   preferred_element_type=jnp.float32)        # (Bt*hg, S, S)
    s = s - jnp.max(s, axis=-1, keepdims=True)                # stable softmax

    if exact:
        # Exact path: f32 exp and exact divide (tight reference behaviour).
        p = jnp.exp(s)
        p = p / jnp.sum(p, axis=-1, keepdims=True)
    else:
        # Fast path: exp in compute_dtype (bf16 EUP on v6e/v7x), f32 row sum,
        # EUP approximate reciprocal for the normalization.
        p = jnp.exp(s.astype(compute_dtype))
        denom = jnp.sum(p, axis=-1, keepdims=True, dtype=jnp.float32)
        p = p * pl.reciprocal(denom, approx=True).astype(compute_dtype)
    # TODO(synk): attention-probs dropout and head_mask are identity in eval mode; not implemented.

    ctx = jnp.einsum("bqk,bkd->bqd", p.astype(compute_dtype), v,
                     preferred_element_type=jnp.float32)      # (Bt*hg, S, d)

    # Cast BEFORE the head-merge relayout, then one lane-dense store.
    ctx = ctx.astype(o_ref.dtype)
    ctx = ctx.reshape(Bt, hg, S, d).transpose(0, 2, 1, 3).reshape(Bt, S, dg)
    o_ref[...] = ctx


def prepare_qkv_weights(wq, wk, wv, bq, bk, bv, *, num_heads: int,
                        head_groups: int = 1, compute_dtype=jnp.bfloat16):
    """Build the fused QKV weight/bias ONCE (model load), not per forward call.

    wq/wk/wv: [H, H] in x @ W orientation; bq/bk/bv: [1, H].
    Returns w_fused: (G, H, 3*dg) in compute_dtype, b_fused: (G, 1, 3*dg) f32,
    with 1/sqrt(head_dim) folded into the query columns / bias.
    """
    H = wq.shape[0]
    assert H % num_heads == 0
    assert num_heads % head_groups == 0
    head_dim = H // num_heads
    dg = (num_heads // head_groups) * head_dim

    scale = 1.0 / math.sqrt(head_dim)
    wq = wq * scale
    bq = bq * scale

    def group_cols(w):                       # (H, H) -> (G, H, dg)
        return w.reshape(H, head_groups, dg).transpose(1, 0, 2)

    def group_bias(b):                       # (1, H) -> (G, 1, dg)
        return b.reshape(1, head_groups, dg).transpose(1, 0, 2)

    w_fused = jnp.concatenate(
        [group_cols(wq), group_cols(wk), group_cols(wv)], axis=-1
    ).astype(compute_dtype)                  # (G, H, 3*dg)
    b_fused = jnp.concatenate(
        [group_bias(bq), group_bias(bk), group_bias(bv)], axis=-1
    ).astype(jnp.float32)                    # (G, 1, 3*dg)
    return w_fused, b_fused


def vit_self_attention(hidden_states, w_fused, b_fused, *, num_heads: int,
                       out_dtype=None, batch_block: int = None,
                       vmem_limit_bytes: int = None):
    """hidden_states: [B, S, H] (f32); w_fused/b_fused from prepare_qkv_weights.

    Grid is (head_groups, batch_blocks) with batch INNERMOST, so the fused
    weight block is fetched only head_groups times. batch_block batch elements
    are processed per grid step (fatter MXU M, amortized overhead).
    Use head_groups=1 on v5e/v6e; head_groups>1 mainly for v7x / VMEM pressure.
    """
    B, S, H = hidden_states.shape
    G, Hw, three_dg = w_fused.shape
    assert Hw == H, "w_fused hidden dim mismatch"
    dg = three_dg // 3
    assert 3 * dg == three_dg
    assert H % num_heads == 0
    head_dim = H // num_heads
    assert dg % head_dim == 0
    heads_per_group = dg // head_dim
    assert heads_per_group * G == num_heads, "head_groups must divide num_heads"
    # Lane-dense output store / valid (8,128) blocking:
    assert dg == H or dg % 128 == 0, \
        "dg = (num_heads//head_groups)*head_dim must equal H or be a multiple of 128"

    compute_dtype = w_fused.dtype
    if out_dtype is None:
        out_dtype = hidden_states.dtype
    if batch_block is None:
        batch_block = next(c for c in (8, 4, 2, 1) if B % c == 0)
    assert B % batch_block == 0, "batch_block must divide B"
    num_batch_blocks = B // batch_block

    kernel = functools.partial(
        _vit_self_attention_kernel,
        heads_per_group=heads_per_group,
        head_dim=head_dim,
        compute_dtype=compute_dtype,
    )

    cp_kwargs = dict(dimension_semantics=("parallel", "parallel"))
    if vmem_limit_bytes is not None:
        cp_kwargs["vmem_limit_bytes"] = vmem_limit_bytes

    return pl.pallas_call(
        kernel,
        out_shape=jax.ShapeDtypeStruct((B, S, H), out_dtype),
        grid_spec=pltpu.PrefetchScalarGridSpec(
            num_scalar_prefetch=0,
            # batch innermost -> weight/bias block index invariant on inner axis.
            grid=(G, num_batch_blocks),
            in_specs=[
                pl.BlockSpec((batch_block, S, H), lambda g, bb: (bb, 0, 0)),
                pl.BlockSpec((1, H, three_dg), lambda g, bb: (g, 0, 0)),
                pl.BlockSpec((1, 1, three_dg), lambda g, bb: (g, 0, 0)),
            ],
            out_specs=pl.BlockSpec((batch_block, S, dg),
                                   lambda g, bb: (bb, 0, g)),
        ),
        compiler_params=pltpu.CompilerParams(**cp_kwargs),
    )(hidden_states, w_fused, b_fused)


def _reference(hidden_states, wq, wk, wv, bq, bk, bv, num_heads):
    """Pure-JAX f32 reference reproducing the PyTorch forward."""
    B, S, H = hidden_states.shape
    d = H // num_heads
    q = hidden_states @ wq + bq
    k = hidden_states @ wk + bk
    v = hidden_states @ wv + bv

    def split(x):  # (B,S,H) -> (B,nh,S,d)
        return x.reshape(B, S, num_heads, d).transpose(0, 2, 1, 3)

    q, k, v = split(q), split(k), split(v)
    scores = jnp.einsum("bhqd,bhkd->bhqk", q, k) / math.sqrt(d)
    probs = jax.nn.softmax(scores, axis=-1)
    ctx = jnp.einsum("bhqk,bhkd->bhqd", probs, v)
    return ctx.transpose(0, 2, 1, 3).reshape(B, S, H)


if __name__ == "__main__":
    # Small ViT-like config: hidden=256, 4 heads (head_dim=64 as in real ViT),
    # seq=16, batch=2.
    B, S, H = 2, 16, 256
    NUM_HEADS = 4

    key = jax.random.PRNGKey(0)
    kx, kwq, kwk, kwv, kbq, kbk, kbv = jax.random.split(key, 7)

    wscale = 1.0 / math.sqrt(H)
    x = jax.random.normal(kx, (B, S, H), dtype=jnp.float32)
    wq = jax.random.normal(kwq, (H, H), dtype=jnp.float32) * wscale
    wk = jax.random.normal(kwk, (H, H), dtype=jnp.float32) * wscale
    wv = jax.random.normal(kwv, (H, H), dtype=jnp.float32) * wscale
    bq = jax.random.normal(kbq, (1, H), dtype=jnp.float32) * 0.1
    bk = jax.random.normal(kbk, (1, H), dtype=jnp.float32) * 0.1
    bv = jax.random.normal(kbv, (1, H), dtype=jnp.float32) * 0.1

    ref = _reference(x, wq, wk, wv, bq, bk, bv, NUM_HEADS)

    # 1) f32 compute path, single head group (widest GEMM/store), 2 batch
    #    elements per grid step -> grid (1, 1), weights fetched once.
    wf32, bf32 = prepare_qkv_weights(wq, wk, wv, bq, bk, bv,
                                     num_heads=NUM_HEADS, head_groups=1,
                                     compute_dtype=jnp.float32)
    out_f32 = vit_self_attention(x, wf32, bf32, num_heads=NUM_HEADS,
                                 batch_block=2)
    out_f32 = jax.block_until_ready(out_f32)
    assert out_f32.shape == (B, S, H)
    assert jnp.allclose(out_f32, ref, atol=2e-2, rtol=2e-2), "f32 path mismatch"

    # 2) bf16 fast path, two head groups (dg=128, lane-dense), batch innermost
    #    grid (2, 2) -> exercises weight-resident inner axis.
    wbf, bbf = prepare_qkv_weights(wq, wk, wv, bq, bk, bv,
                                   num_heads=NUM_HEADS, head_groups=2,
                                   compute_dtype=jnp.bfloat16)
    out_bf = vit_self_attention(x, wbf, bbf, num_heads=NUM_HEADS,
                                batch_block=1)
    out_bf = jax.block_until_ready(out_bf)
    assert out_bf.shape == (B, S, H)
    assert jnp.allclose(out_bf, ref, atol=1e-1, rtol=1e-1), "bf16 path mismatch"

    print("KERNEL_OK")
</pallas_src>

<mosaic_0001>
module attributes {stable_mosaic.version = 11 : i64} {
  func.func @_vit_self_attention_kernel(%arg0: i32, %arg1: i32, %arg2: memref<2x16x256xf32, #tpu.memory_space<vmem>>, %arg3: memref<1x256x768xf32, #tpu.memory_space<vmem>>, %arg4: memref<1x1x768xf32, #tpu.memory_space<vmem>>, %arg5: memref<2x16x256xf32, #tpu.memory_space<vmem>>) attributes {dimension_semantics = [#tpu.dimension_semantics<parallel>, #tpu.dimension_semantics<parallel>], iteration_bounds = array<i64: 1, 1>, scalar_prefetch = 0 : i64, scratch_operands = 0 : i64, tpu.core_type = #tpu.core_type<tc>, window_params = [{transform_indices = @transform_0, window_bounds = array<i64: 2, 16, 256>}, {transform_indices = @transform_1, window_bounds = array<i64: 1, 256, 768>}, {transform_indices = @transform_2, window_bounds = array<i64: 1, 1, 768>}, {transform_indices = @transform_3, window_bounds = array<i64: 2, 16, 256>}]} {
    %c0 = arith.constant 0 : index
    %c0_0 = arith.constant 0 : index
    %c0_1 = arith.constant 0 : index
    %0 = vector.load %arg2[%c0, %c0_0, %c0_1] : memref<2x16x256xf32, #tpu.memory_space<vmem>>, vector<2x16x256xf32>
    %1 = vector.shape_cast %0 : vector<2x16x256xf32> to vector<32x256xf32>
    %c0_2 = arith.constant 0 : index
    %c0_3 = arith.constant 0 : index
    %c0_4 = arith.constant 0 : index
    %2 = vector.load %arg3[%c0_2, %c0_3, %c0_4] : memref<1x256x768xf32, #tpu.memory_space<vmem>>, vector<1x256x768xf32>
    %3 = vector.shape_cast %2 : vector<1x256x768xf32> to vector<256x768xf32>
    %c0_5 = arith.constant 0 : index
    %c0_6 = arith.constant 0 : index
    %c0_7 = arith.constant 0 : index
    %4 = vector.load %arg4[%c0_5, %c0_6, %c0_7] : memref<1x1x768xf32, #tpu.memory_space<vmem>>, vector<1x1x768xf32>
    %5 = vector.shape_cast %4 : vector<1x1x768xf32> to vector<1x768xf32>
    %cst = arith.constant dense<0.000000e+00> : vector<32x768xf32>
    %6 = tpu.matmul %1, %3, %cst {dimension_numbers = #tpu.dot_dimension_numbers<[1], [0], [0], [1], [0, 0, 1, 1], [], []>} : vector<32x256xf32>, vector<256x768xf32>, vector<32x768xf32> -> vector<32x768xf32>
    %7 = vector.broadcast %5 : vector<1x768xf32> to vector<32x768xf32>
    %8 = arith.addf %6, %7 : vector<32x768xf32>
    %9 = vector.extract_strided_slice %8 {offsets = [0, 0], sizes = [32, 256], strides = [1, 1]} : vector<32x768xf32> to vector<32x256xf32>
    %10 = vector.shape_cast %9 : vector<32x256xf32> to vector<2x16x4x64xf32>
    %11 = tpu.transpose %10, [0, 2, 1, 3] : vector<2x16x4x64xf32> -> vector<2x4x16x64xf32>
    %12 = vector.shape_cast %11 : vector<2x4x16x64xf32> to vector<8x16x64xf32>
    %13 = vector.extract_strided_slice %8 {offsets = [0, 256], sizes = [32, 256], strides = [1, 1]} : vector<32x768xf32> to vector<32x256xf32>
    %14 = vector.shape_cast %13 : vector<32x256xf32> to vector<2x16x4x64xf32>
    %15 = tpu.transpose %14, [0, 2, 1, 3] : vector<2x16x4x64xf32> -> vector<2x4x16x64xf32>
    %16 = vector.shape_cast %15 : vector<2x4x16x64xf32> to vector<8x16x64xf32>
    %17 = vector.extract_strided_slice %8 {offsets = [0, 512], sizes = [32, 256], strides = [1, 1]} : vector<32x768xf32> to vector<32x256xf32>
    %18 = vector.shape_cast %17 : vector<32x256xf32> to vector<2x16x4x64xf32>
    %19 = tpu.transpose %18, [0, 2, 1, 3] : vector<2x16x4x64xf32> -> vector<2x4x16x64xf32>
    %20 = vector.shape_cast %19 : vector<2x4x16x64xf32> to vector<8x16x64xf32>
    "tpu.trace_start"() <{level = 10 : i32, message = "bqd,bkd->bqk"}> : () -> ()
    %cst_8 = arith.constant dense<0.000000e+00> : vector<8x16x16xf32>
    %21 = tpu.matmul %12, %16, %cst_8 {dimension_numbers = #tpu.dot_dimension_numbers<[2], [2], [1], [1], [0, 0, 0, 1, 1, 1], [0], [0]>} : vector<8x16x64xf32>, vector<8x16x64xf32>, vector<8x16x16xf32> -> vector<8x16x16xf32>
    "tpu.trace_stop"() : () -> ()
    %cst_9 = arith.constant dense<0xFF800000> : vector<8x16xf32>
    %22 = vector.multi_reduction <maximumf>, %21, %cst_9 [2] : vector<8x16x16xf32> to vector<8x16xf32>
    %23 = vector.shape_cast %22 : vector<8x16xf32> to vector<8x16x1xf32>
    %24 = vector.broadcast %23 : vector<8x16x1xf32> to vector<8x16x16xf32>
    %25 = arith.subf %21, %24 : vector<8x16x16xf32>
    %26 = math.exp %25 : vector<8x16x16xf32>
    %cst_10 = arith.constant dense<0.000000e+00> : vector<8x16xf32>
    %27 = vector.multi_reduction <add>, %26, %cst_10 [2] : vector<8x16x16xf32> to vector<8x16xf32>
    %28 = vector.shape_cast %27 : vector<8x16xf32> to vector<8x16x1xf32>
    %29 = vector.broadcast %28 : vector<8x16x1xf32> to vector<8x16x16xf32>
    %30 = arith.divf %26, %29 : vector<8x16x16xf32>
    "tpu.trace_start"() <{level = 10 : i32, message = "bqk,bkd->bqd"}> : () -> ()
    %cst_11 = arith.constant dense<0.000000e+00> : vector<8x16x64xf32>
    %31 = tpu.matmul %30, %20, %cst_11 {dimension_numbers = #tpu.dot_dimension_numbers<[2], [1], [1], [2], [0, 0, 0, 1, 1, 2], [0], [0]>} : vector<8x16x16xf32>, vector<8x16x64xf32>, vector<8x16x64xf32> -> vector<8x16x64xf32>
    "tpu.trace_stop"() : () -> ()
    %32 = vector.shape_cast %31 : vector<8x16x64xf32> to vector<2x4x16x64xf32>
    %33 = tpu.transpose %32, [0, 2, 1, 3] : vector<2x4x16x64xf32> -> vector<2x16x4x64xf32>
    %34 = vector.shape_cast %33 : vector<2x16x4x64xf32> to vector<2x16x256xf32>
    %c0_12 = arith.constant 0 : index
    %c0_13 = arith.constant 0 : index
    %c0_14 = arith.constant 0 : index
    %35 = vector.load %arg5[%c0_12, %c0_13, %c0_14] : memref<2x16x256xf32, #tpu.memory_space<vmem>>, vector<2x16x256xf32>
    tpu.vector_store %arg5[%c0_12, %c0_13, %c0_14], %34 {strides = array<i32>} : memref<2x16x256xf32, #tpu.memory_space<vmem>>, vector<2x16x256xf32>,
    return
  }
  func.func @transform_0(%arg0: i32, %arg1: i32) -> (i32, i32, i32) {
    %c0_i32 = arith.constant 0 : i32
    %c0_i32_0 = arith.constant 0 : i32
    %c0_i32_1 = arith.constant 0 : i32
    return %arg1, %c0_i32, %c0_i32_0 : i32, i32, i32
  }
  func.func @transform_1(%arg0: i32, %arg1: i32) -> (i32, i32, i32) {
    %c0_i32 = arith.constant 0 : i32
    %c0_i32_0 = arith.constant 0 : i32
    %c0_i32_1 = arith.constant 0 : i32
    return %arg0, %c0_i32, %c0_i32_0 : i32, i32, i32
  }
  func.func @transform_2(%arg0: i32, %arg1: i32) -> (i32, i32, i32) {
    %c0_i32 = arith.constant 0 : i32
    %c0_i32_0 = arith.constant 0 : i32
    %c0_i32_1 = arith.constant 0 : i32
    return %arg0, %c0_i32, %c0_i32_0 : i32, i32, i32
  }
  func.func @transform_3(%arg0: i32, %arg1: i32) -> (i32, i32, i32) {
    %c0_i32 = arith.constant 0 : i32
    %c0_i32_0 = arith.constant 0 : i32
    return %arg1, %c0_i32, %arg0 : i32, i32, i32
  }
}

</mosaic_0001>

<bundles_post_ra>
// kernel: tpu_custom_call.1
= control target key start
LH: loop header
LB: loop body
LE: loop exit
PB: predicated region body
PF: predicated region fallthrough
CT: control target
= control target key end

     0   :  { %8 = vsyncpa [#allocation3], 0  ;;  %s5891_s0 = inlined_call_operand.hbm [shape: f32[2,16,256], index: 0, kind: input, shape index: {}]   ;;  %s5892_s1 = inlined_call_operand.hbm [shape: f32[1,256,768], index: 1, kind: input, shape index: {}]   ;;  %s5893_s2 = inlined_call_operand.hbm [shape: f32[1,1,768], index: 2, kind: input, shape index: {}]   ;;  %s5894_s3 = inlined_call_operand.hbm [shape: f32[2,16,256], index: 3, kind: output, shape index: {}]  }
   0x1   :  { %9 = vsyncpa [#allocation6], 0 }
   0x2   :  { %10 = vsyncpa [#allocation4], 0  ;;  %s4830_s12 = smov [#allocation5]  }
   0x3   :  { %s28_s13 = sshll.u32 %s4830_s12, 4  ;;  %s29_s13 = int_to_ptr.vmem [resolvable:$true] %s28_s13 }
   0x4   :  { %s4752_s14 = scalar_lea.vmem %s29_s13, 24576  ;;  %p4757_p1 = scmp.lt.s32.totalorder %s29_s13, %s29_s13 }
   0x5   :  { %p4753_p0 = scmp.ne.s32.totalorder %s29_s13, %s4752_s14  ;;  %p4758_p2 = scmp.lt.s32.totalorder %s4752_s14, %s4752_s14 }
   0x7   :  { %p4759_p3 = por %p4758_p2, %p4757_p1 }
   0x9   :  { %p4760_p4 = pnand %p4759_p3, %p4753_p0 }
   0xb   :  { %4763 = shalt.err (!%p4760_p4)
}
   0xc   :  { %s4831_s15 = smov 768   ;;  %s4832_s16 = smov 48  }
   0xd   :  { %34 = dma.hbm_to_vmem [thread:$0]  %s5892_s1, 24576, %s29_s13, [#allocation6], %s4831_s15, %s4831_s15, %s4832_s16  }
   0xe   :  { %s4833_s19 = smov [#allocation2]  }
   0xf   :  { %s16_s20 = sshll.u32 %s4833_s19, 4  ;;  %s17_s20 = int_to_ptr.vmem [resolvable:$true] %s16_s20 }
  0x10   :  { %s4772_s21 = scalar_lea.vmem %s17_s20, 1024  ;;  %p4777_p6 = scmp.lt.s32.totalorder %s17_s20, %s17_s20 }
  0x11   :  { %p4773_p5 = scmp.ne.s32.totalorder %s17_s20, %s4772_s21  ;;  %p4778_p7 = scmp.lt.s32.totalorder %s4772_s21, %s4772_s21 }
  0x13   :  { %p4779_p8 = por %p4778_p7, %p4777_p6 }
  0x15   :  { %p4780_p9 = pnand %p4779_p8, %p4773_p5 }
  0x17   :  { %4783 = shalt.err (!%p4780_p9)
}
  0x18   :  { %s4834_s22 = smov 256   ;;  %s4835_s23 = smov 16  }
  0x19   :  { %22 = dma.hbm_to_vmem [thread:$0]  %s5891_s0, 1024, %s17_s20, [#allocation3], %s4834_s22, %s4834_s22, %s4835_s23  }
  0x1a   :  { %s4836_s1 = smov [#allocation7]  }
  0x1b   :  { %s41_s26 = sshll.u32 %s4836_s1, 4  ;;  %s42_s26 = int_to_ptr.vmem [resolvable:$true] %s41_s26 }
  0x1c   :  { %s4792_s27 = scalar_lea.vmem %s42_s26, 96  ;;  %p4797_p11 = scmp.lt.s32.totalorder %s42_s26, %s42_s26 }
  0x1d   :  { %p4793_p10 = scmp.ne.s32.totalorder %s42_s26, %s4792_s27  ;;  %p4798_p12 = scmp.lt.s32.totalorder %s4792_s27, %s4792_s27 }
  0x1f   :  { %p4799_p13 = por %p4798_p12, %p4797_p11 }
  0x21   :  { %p4800_p0 = pnand %p4799_p13, %p4793_p10 }
  0x23   :  { %4803 = shalt.err (!%p4800_p0)
}
  0x24   :  { %44 = dma.hbm_to_vmem [thread:$0]  %s5893_s2, 96, %s42_s26, [#allocation6]  }
  0x25   :  { %4824 = dma.done.wait [#allocation3], 1024  }
  0x26   :  { %4825 = vsyncadd [#allocation3], 4294966272 }
  0x27   :  { %4826 = dma.done.wait [#allocation6], 24672  }
  0x28   :  { %4827 = vsyncadd [#allocation6], 4294942624  ;;  %v155_v0 = vld [vmem:[#allocation5 + $0x2e8] sm:$0xff]  ;;  %v154_v1 = vld [vmem:[#allocation5 + $0x2e0] sm:$0xff]  ;;  %s4837_s0 = smov 64   ;;  %vm2281_vm0 = vcmask 523264  }
  0x29   :  { %v149_v2 = vld [vmem:[#allocation5 + $0x2b8] sm:$0xff]  ;;  %375 = vmatprep.subr.mxu1 %v155_v0  ;;  %v148_v3 = vld [vmem:[#allocation5 + $0x2b0] sm:$0xff]  ;;  %v143_v4 = vld [vmem:[#allocation5 + $0x288] sm:$0xff]  ;;  %vm2978_vm1 = vcmask 130048   ;;  %s4840_s2 = smov [#allocation8]  }
  0x2a   :  { %376 = vmatpush1.msra.mxu1 %v154_v1  ;;  %v142_v5 = vld [vmem:[#allocation5 + $0x280] sm:$0xff]  ;;  %v153_v6 = vld [vmem:[#allocation5 + $0x2d8] sm:$0xff]  ;;  %v152_v8 = vld [vmem:[#allocation5 + $0x2d0] sm:$0xff]  ;;  %s4400_s30 = sshll.u32 %s4840_s2, 4  ;;  %s4401_s30 = int_to_ptr.vmem [resolvable:$true] %s4400_s30 }
  0x2b   :  { %377 = vmatprep.subr.mxu1 %v149_v2  ;;  %v137_v7 = vld [vmem:[#allocation5 + $0x258] sm:$0xff]  ;;  %286 = vmatprep.subr.mxu0 %v153_v6  ;;  %v147_v9 = vld [vmem:[#allocation5 + $0x2a8] sm:$0xff]  ;;  %v136_v10 = vld [vmem:[#allocation5 + $0x250] sm:$0xff]  ;;  %s4804_s4 = scalar_lea.vmem %s4401_s30, 1024  ;;  %p4809_p2 = scmp.lt.s32.totalorder %s4401_s30, %s4401_s30 }
  0x2c   :  { %378 = vmatpush1.msra.mxu1 %v148_v3  ;;  %287 = vmatpush1.msra.mxu0 %v152_v8  ;;  %v146_v11 = vld [vmem:[#allocation5 + $0x2a0] sm:$0xff]  ;;  %v131_v12 = vld [vmem:[#allocation5 + $0x228] sm:$0xff]  ;;  %v141_v13 = vld [vmem:[#allocation5 + $0x278] sm:$0xff]  ;;  %p4805_p1 = scmp.ne.s32.totalorder %s4401_s30, %s4804_s4  ;;  %p4810_p3 = scmp.lt.s32.totalorder %s4804_s4, %s4804_s4 }
  0x2d   :  { %379 = vmatprep.subr.mxu1 %v143_v4  ;;  %288 = vmatprep.subr.mxu0 %v147_v9  ;;  %v140_v14 = vld [vmem:[#allocation5 + $0x270] sm:$0xff]  ;;  %v130_v15 = vld [vmem:[#allocation5 + $0x220] sm:$0xff]  ;;  %v135_v16 = vld [vmem:[#allocation5 + $0x248] sm:$0xff] }
  0x2e   :  { %380 = vmatpush1.msra.mxu1 %v142_v5  ;;  %289 = vmatpush1.msra.mxu0 %v146_v11  ;;  %v125_v17 = vld [vmem:[#allocation5 + $0x1f8] sm:$0xff]  ;;  %v134_v18 = vld [vmem:[#allocation5 + $0x240] sm:$0xff]  ;;  %v124_v19 = vld [vmem:[#allocation5 + $0x1f0] sm:$0xff]  ;;  %p4811_p4 = por %p4810_p3, %p4809_p2 }
  0x2f   :  { %381 = vmatprep.subr.mxu1 %v137_v7  ;;  %290 = vmatprep.subr.mxu0 %v141_v13  ;;  %v129_v20 = vld [vmem:[#allocation5 + $0x218] sm:$0xff]  ;;  %v119_v21 = vld [vmem:[#allocation5 + $0x1c8] sm:$0xff]  ;;  %v128_v22 = vld [vmem:[#allocation5 + $0x210] sm:$0xff] }
  0x30   :  { %382 = vmatpush1.msra.mxu1 %v136_v10  ;;  %291 = vmatpush1.msra.mxu0 %v140_v14  ;;  %v118_v23 = vld [vmem:[#allocation5 + $0x1c0] sm:$0xff]  ;;  %v123_v24 = vld [vmem:[#allocation5 + $0x1e8] sm:$0xff]  ;;  %v113_v25 = vld [vmem:[#allocation5 + $0x198] sm:$0xff]  ;;  %p4812_p5 = pnand %p4811_p4, %p4805_p1 }
  0x31   :  { %383 = vmatprep.subr.mxu1 %v131_v12  ;;  %292 = vmatprep.subr.mxu0 %v135_v16  ;;  %v122_v26 = vld [vmem:[#allocation5 + $0x1e0] sm:$0xff]  ;;  %v112_v27 = vld [vmem:[#allocation5 + $0x190] sm:$0xff]  ;;  %v117_v28 = vld [vmem:[#allocation5 + $0x1b8] sm:$0xff] }
  0x32   :  { %384 = vmatpush1.msra.mxu1 %v130_v15  ;;  %293 = vmatpush1.msra.mxu0 %v134_v18  ;;  %v107_v29 = vld [vmem:[#allocation5 + $0x168] sm:$0xff]  ;;  %v116_v30 = vld [vmem:[#allocation5 + $0x1b0] sm:$0xff]  ;;  %v106_v31 = vld [vmem:[#allocation5 + $0x160] sm:$0xff] }
  0x33   :  { %385 = vmatprep.subr.mxu1 %v125_v17  ;;  %294 = vmatprep.subr.mxu0 %v129_v20  ;;  %v111_v32 = vld [vmem:[#allocation5 + $0x188] sm:$0xff]  ;;  %v101_v33 = vld [vmem:[#allocation5 + $0x138] sm:$0xff]  ;;  %v110_v34 = vld [vmem:[#allocation5 + $0x180] sm:$0xff] }
  0x34   :  { %386 = vmatpush1.msra.mxu1 %v124_v19  ;;  %295 = vmatpush1.msra.mxu0 %v128_v22  ;;  %v100_v35 = vld [vmem:[#allocation5 + $0x130] sm:$0xff]  ;;  %v105_v36 = vld [vmem:[#allocation5 + $0x158] sm:$0xff]  ;;  %v95_v37 = vld [vmem:[#allocation5 + $0x108] sm:$0xff] }
  0x35   :  { %387 = vmatprep.subr.mxu1 %v119_v21  ;;  %296 = vmatprep.subr.mxu0 %v123_v24  ;;  %v104_v38 = vld [vmem:[#allocation5 + $0x150] sm:$0xff]  ;;  %v94_v39 = vld [vmem:[#allocation5 + $0x100] sm:$0xff]  ;;  %v99_v40 = vld [vmem:[#allocation5 + $0x128] sm:$0xff] }
  0x36   :  { %388 = vmatpush1.msra.mxu1 %v118_v23  ;;  %297 = vmatpush1.msra.mxu0 %v122_v26  ;;  %v89_v41 = vld [vmem:[#allocation5 + $0xd8] sm:$0xff]  ;;  %v98_v42 = vld [vmem:[#allocation5 + $0x120] sm:$0xff]  ;;  %v88_v43 = vld [vmem:[#allocation5 + $0xd0] sm:$0xff] }
  0x37   :  { %389 = vmatprep.subr.mxu1 %v113_v25  ;;  %298 = vmatprep.subr.mxu0 %v117_v28  ;;  %v93_v44 = vld [vmem:[#allocation5 + $0xf8] sm:$0xff]  ;;  %v83_v45 = vld [vmem:[#allocation5 + $0xa8] sm:$0xff]  ;;  %v92_v46 = vld [vmem:[#allocation5 + $0xf0] sm:$0xff] }
  0x38   :  { %390 = vmatpush1.msra.mxu1 %v112_v27  ;;  %299 = vmatpush1.msra.mxu0 %v116_v30  ;;  %v82_v47 = vld [vmem:[#allocation5 + $0xa0] sm:$0xff]  ;;  %v87_v48 = vld [vmem:[#allocation5 + $0xc8] sm:$0xff]  ;;  %v77_v49 = vld [vmem:[#allocation5 + $0x78] sm:$0xff] }
  0x39   :  { %391 = vmatprep.subr.mxu1 %v107_v29  ;;  %300 = vmatprep.subr.mxu0 %v111_v32  ;;  %v86_v50 = vld [vmem:[#allocation5 + $0xc0] sm:$0xff]  ;;  %v76_v51 = vld [vmem:[#allocation5 + $0x70] sm:$0xff]  ;;  %v81_v52 = vld [vmem:[#allocation5 + $0x98] sm:$0xff] }
  0x3a   :  { %392 = vmatpush1.msra.mxu1 %v106_v31  ;;  %301 = vmatpush1.msra.mxu0 %v110_v34  ;;  %v71_v53 = vld [vmem:[#allocation5 + $0x48] sm:$0xff]  ;;  %v80_v54 = vld [vmem:[#allocation5 + $0x90] sm:$0xff]  ;;  %v70_v55 = vld [vmem:[#allocation5 + $0x40] sm:$0xff] }
  0x3b   :  { %393 = vmatprep.subr.mxu1 %v101_v33  ;;  %302 = vmatprep.subr.mxu0 %v105_v36  ;;  %v75_v56 = vld [vmem:[#allocation5 + $0x68] sm:$0xff]  ;;  %v65_v57 = vld [vmem:[#allocation5 + $0x18] sm:$0xff]  ;;  %v74_v58 = vld [vmem:[#allocation5 + $0x60] sm:$0xff] }
  0x3c   :  { %394 = vmatpush1.msra.mxu1 %v100_v35  ;;  %303 = vmatpush1.msra.mxu0 %v104_v38  ;;  %v64_v59 = vld [vmem:[#allocation5 + $0x10] sm:$0xff]  ;;  %v69_v60 = vld [vmem:[#allocation5 + $0x38] sm:$0xff]  ;;  %v251_v61 = vld [vmem:[#allocation5 + $0x5e8] sm:$0xff] }
  0x3d   :  { %395 = vmatprep.subr.mxu1 %v95_v37  ;;  %304 = vmatprep.subr.mxu0 %v99_v40  ;;  %v68_v62 = vld [vmem:[#allocation5 + $0x30] sm:$0xff]  ;;  %v250_v63 = vld [vmem:[#allocation5 + $0x5e0] sm:$0xff]  ;;  %v63_v0 = vld [vmem:[#allocation5 + $0x8] sm:$0xff] }
  0x3e   :  { %396 = vmatpush1.msra.mxu1 %v94_v39  ;;  %305 = vmatpush1.msra.mxu0 %v98_v42  ;;  %v245_v1 = vld [vmem:[#allocation5 + $0x5b8] sm:$0xff]  ;;  %v62_v2 = vld [vmem:[#allocation5] sm:$0xff]  ;;  %v244_v3 = vld [vmem:[#allocation5 + $0x5b0] sm:$0xff] }
  0x3f   :  { %397 = vmatprep.subr.mxu1 %v89_v41  ;;  %306 = vmatprep.subr.mxu0 %v93_v44  ;;  %v249_v4 = vld [vmem:[#allocation5 + $0x5d8] sm:$0xff]  ;;  %v239_v5 = vld [vmem:[#allocation5 + $0x588] sm:$0xff]  ;;  %v248_v6 = vld [vmem:[#allocation5 + $0x5d0] sm:$0xff] }
  0x40   :  { %398 = vmatpush1.msra.mxu1 %v88_v43  ;;  %307 = vmatpush1.msra.mxu0 %v92_v46  ;;  %v238_v7 = vld [vmem:[#allocation5 + $0x580] sm:$0xff]  ;;  %v243_v8 = vld [vmem:[#allocation5 + $0x5a8] sm:$0xff]  ;;  %v233_v9 = vld [vmem:[#allocation5 + $0x558] sm:$0xff] }
  0x41   :  { %399 = vmatprep.subr.mxu1 %v83_v45  ;;  %308 = vmatprep.subr.mxu0 %v87_v48  ;;  %v242_v10 = vld [vmem:[#allocation5 + $0x5a0] sm:$0xff]  ;;  %v232_v11 = vld [vmem:[#allocation5 + $0x550] sm:$0xff]  ;;  %v237_v12 = vld [vmem:[#allocation5 + $0x578] sm:$0xff] }
  0x42   :  { %400 = vmatpush1.msra.mxu1 %v82_v47  ;;  %309 = vmatpush1.msra.mxu0 %v86_v50  ;;  %v227_v13 = vld [vmem:[#allocation5 + $0x528] sm:$0xff]  ;;  %v236_v14 = vld [vmem:[#allocation5 + $0x570] sm:$0xff]  ;;  %v226_v15 = vld [vmem:[#allocation5 + $0x520] sm:$0xff] }
  0x43   :  { %401 = vmatprep.subr.mxu1 %v77_v49  ;;  %310 = vmatprep.subr.mxu0 %v81_v52  ;;  %v231_v16 = vld [vmem:[#allocation5 + $0x548] sm:$0xff]  ;;  %v221_v17 = vld [vmem:[#allocation5 + $0x4f8] sm:$0xff]  ;;  %v230_v18 = vld [vmem:[#allocation5 + $0x540] sm:$0xff] }
  0x44   :  { %402 = vmatpush1.msra.mxu1 %v76_v51  ;;  %311 = vmatpush1.msra.mxu0 %v80_v54  ;;  %v220_v19 = vld [vmem:[#allocation5 + $0x4f0] sm:$0xff]  ;;  %v225_v20 = vld [vmem:[#allocation5 + $0x518] sm:$0xff]  ;;  %v215_v21 = vld [vmem:[#allocation5 + $0x4c8] sm:$0xff] }
  0x45   :  { %403 = vmatprep.subr.mxu1 %v71_v53  ;;  %312 = vmatprep.subr.mxu0 %v75_v56  ;;  %v224_v22 = vld [vmem:[#allocation5 + $0x510] sm:$0xff]  ;;  %v214_v23 = vld [vmem:[#allocation5 + $0x4c0] sm:$0xff]  ;;  %v219_v24 = vld [vmem:[#allocation5 + $0x4e8] sm:$0xff] }
  0x46   :  { %404 = vmatpush1.msra.mxu1 %v70_v55  ;;  %313 = vmatpush1.msra.mxu0 %v74_v58  ;;  %v209_v25 = vld [vmem:[#allocation5 + $0x498] sm:$0xff]  ;;  %v218_v26 = vld [vmem:[#allocation5 + $0x4e0] sm:$0xff]  ;;  %v208_v27 = vld [vmem:[#allocation5 + $0x490] sm:$0xff] }
  0x47   :  { %405 = vmatprep.subr.mxu1 %v65_v57  ;;  %314 = vmatprep.subr.mxu0 %v69_v60  ;;  %v213_v28 = vld [vmem:[#allocation5 + $0x4b8] sm:$0xff]  ;;  %v203_v29 = vld [vmem:[#allocation5 + $0x468] sm:$0xff]  ;;  %v212_v30 = vld [vmem:[#allocation5 + $0x4b0] sm:$0xff] }
  0x48   :  { %406 = vmatpush1.msra.mxu1 %v64_v59  ;;  %315 = vmatpush1.msra.mxu0 %v68_v62  ;;  %v202_v31 = vld [vmem:[#allocation5 + $0x460] sm:$0xff]  ;;  %v207_v32 = vld [vmem:[#allocation5 + $0x488] sm:$0xff]  ;;  %v197_v33 = vld [vmem:[#allocation5 + $0x438] sm:$0xff] }
  0x49   :  { %407 = vmatprep.subr.mxu1 %v251_v61  ;;  %316 = vmatprep.subr.mxu0 %v63_v0  ;;  %v206_v34 = vld [vmem:[#allocation5 + $0x480] sm:$0xff]  ;;  %v196_v35 = vld [vmem:[#allocation5 + $0x430] sm:$0xff]  ;;  %v201_v36 = vld [vmem:[#allocation5 + $0x458] sm:$0xff] }
  0x4a   :  { %408 = vmatpush2.msra.mxu1 %v250_v63  ;;  %317 = vmatpush1.msra.mxu0 %v62_v2  ;;  %v191_v37 = vld [vmem:[#allocation5 + $0x408] sm:$0xff]  ;;  %v200_v38 = vld [vmem:[#allocation5 + $0x450] sm:$0xff]  ;;  %v190_v39 = vld [vmem:[#allocation5 + $0x400] sm:$0xff] }
  0x4b   :  { %409 = vmatprep.subr.mxu1 %v245_v1  ;;  %318 = vmatprep.subr.mxu0 %v249_v4  ;;  %v195_v40 = vld [vmem:[#allocation5 + $0x428] sm:$0xff]  ;;  %v185_v41 = vld [vmem:[#allocation5 + $0x3d8] sm:$0xff]  ;;  %v194_v42 = vld [vmem:[#allocation5 + $0x420] sm:$0xff] }
  0x4c   :  { %410 = vmatpush2.msra.mxu1 %v244_v3  ;;  %319 = vmatpush2.msra.mxu0 %v248_v6  ;;  %v184_v43 = vld [vmem:[#allocation5 + $0x3d0] sm:$0xff]  ;;  %v189_v44 = vld [vmem:[#allocation5 + $0x3f8] sm:$0xff]  ;;  %v179_v45 = vld [vmem:[#allocation5 + $0x3a8] sm:$0xff] }
  0x4d   :  { %411 = vmatprep.subr.mxu1 %v239_v5  ;;  %320 = vmatprep.subr.mxu0 %v243_v8  ;;  %v188_v46 = vld [vmem:[#allocation5 + $0x3f0] sm:$0xff]  ;;  %v178_v47 = vld [vmem:[#allocation5 + $0x3a0] sm:$0xff]  ;;  %v4873_v48 = vld [vmem:[#allocation2 + $0x8] sm:$0xff] }
  0x4e   :  { %412 = vmatpush2.msra.mxu1 %v238_v7  ;;  %321 = vmatpush2.msra.mxu0 %v242_v10  ;;  %v173_v49 = vld [vmem:[#allocation5 + $0x378] sm:$0xff]  ;;  %v183_v50 = vld [vmem:[#allocation5 + $0x3c8] sm:$0xff]  ;;  %v172_v51 = vld [vmem:[#allocation5 + $0x370] sm:$0xff] }
  0x4f   :  { %413 = vmatprep.subr.mxu1 %v233_v9  ;;  %322 = vmatprep.subr.mxu0 %v237_v12  ;;  %v182_v52 = vld [vmem:[#allocation5 + $0x3c0] sm:$0xff]  ;;  %v167_v53 = vld [vmem:[#allocation5 + $0x348] sm:$0xff]  ;;  %v177_v54 = vld [vmem:[#allocation5 + $0x398] sm:$0xff] }
  0x50   :  { %414 = vmatpush2.msra.mxu1 %v232_v11  ;;  %323 = vmatpush2.msra.mxu0 %v236_v14  ;;  %v166_v55 = vld [vmem:[#allocation5 + $0x340] sm:$0xff]  ;;  %v176_v56 = vld [vmem:[#allocation5 + $0x390] sm:$0xff]  ;;  %v161_v57 = vld [vmem:[#allocation5 + $0x318] sm:$0xff] }
  0x51   :  { %415 = vmatprep.subr.mxu1 %v227_v13  ;;  %324 = vmatprep.subr.mxu0 %v231_v16  ;;  %v171_v58 = vld [vmem:[#allocation5 + $0x368] sm:$0xff]  ;;  %v160_v59 = vld [vmem:[#allocation5 + $0x310] sm:$0xff]  ;;  %v170_v60 = vld [vmem:[#allocation5 + $0x360] sm:$0xff] }
  0x52   :  { %416 = vmatpush2.msra.mxu1 %v226_v15  ;;  %325 = vmatpush2.msra.mxu0 %v230_v18  ;;  %v4876_v61 = vld [vmem:[#allocation2] sm:$0xff]  ;;  %v165_v62 = vld [vmem:[#allocation5 + $0x338] sm:$0xff]  ;;  %v164_v0 = vld [vmem:[#allocation5 + $0x330] sm:$0xff] }
  0x53   :  { %417 = vmatprep.subr.mxu1 %v221_v17  ;;  %326 = vmatprep.subr.mxu0 %v225_v20  ;;  %v4878_v63 = vld [vmem:[#allocation2 + $0x18] sm:$0xff]  ;;  %v159_v1 = vld [vmem:[#allocation5 + $0x308] sm:$0xff]  ;;  %v158_v2 = vld [vmem:[#allocation5 + $0x300] sm:$0xff] }
  0x54   :  { %418 = vmatpush2.msra.mxu1 %v220_v19  ;;  %327 = vmatpush2.msra.mxu0 %v224_v22  ;;  %v4882_v3 = vld [vmem:[#allocation2 + $0x10] sm:$0xff]  ;;  %v4885_v4 = vld [vmem:[#allocation2 + $0x28] sm:$0xff]  ;;  %v157_v5 = vld [vmem:[#allocation5 + $0x2f8] sm:$0xff] }
  0x55   :  { %419 = vmatprep.subr.mxu1 %v215_v21  ;;  %328 = vmatprep.subr.mxu0 %v219_v24  ;;  %v156_v6 = vld [vmem:[#allocation5 + $0x2f0] sm:$0xff]  ;;  %v4891_v7 = vld [vmem:[#allocation2 + $0x20] sm:$0xff]  ;;  %v4893_v8 = vld [vmem:[#allocation2 + $0x38] sm:$0xff] }
  0x56   :  { %420 = vmatpush2.msra.mxu1 %v214_v23  ;;  %329 = vmatpush2.msra.mxu0 %v218_v26  ;;  %v151_v9 = vld [vmem:[#allocation5 + $0x2c8] sm:$0xff]  ;;  %v150_v10 = vld [vmem:[#allocation5 + $0x2c0] sm:$0xff]  ;;  %v4898_v11 = vld [vmem:[#allocation2 + $0x30] sm:$0xff] }
  0x57   :  { %421 = vmatprep.subr.mxu1 %v209_v25  ;;  %330 = vmatprep.subr.mxu0 %v213_v28  ;;  %v145_v12 = vld [vmem:[#allocation5 + $0x298] sm:$0xff]  ;;  %v144_v13 = vld [vmem:[#allocation5 + $0x290] sm:$0xff]  ;;  %v139_v14 = vld [vmem:[#allocation5 + $0x268] sm:$0xff] }
  0x58   :  { %422 = vmatpush2.msra.mxu1 %v208_v27  ;;  %331 = vmatpush2.msra.mxu0 %v212_v30  ;;  %v138_v15 = vld [vmem:[#allocation5 + $0x260] sm:$0xff]  ;;  %v133_v16 = vld [vmem:[#allocation5 + $0x238] sm:$0xff]  ;;  %v132_v17 = vld [vmem:[#allocation5 + $0x230] sm:$0xff] }
  0x59   :  { %423 = vmatprep.subr.mxu1 %v203_v29  ;;  %332 = vmatprep.subr.mxu0 %v207_v32  ;;  %v127_v18 = vld [vmem:[#allocation5 + $0x208] sm:$0xff]  ;;  %v126_v19 = vld [vmem:[#allocation5 + $0x200] sm:$0xff]  ;;  %v121_v20 = vld [vmem:[#allocation5 + $0x1d8] sm:$0xff] }
  0x5a   :  { %424 = vmatpush2.msra.mxu1 %v202_v31  ;;  %333 = vmatpush2.msra.mxu0 %v206_v34  ;;  %v120_v21 = vld [vmem:[#allocation5 + $0x1d0] sm:$0xff]  ;;  %v115_v22 = vld [vmem:[#allocation5 + $0x1a8] sm:$0xff]  ;;  %v114_v23 = vld [vmem:[#allocation5 + $0x1a0] sm:$0xff] }
  0x5b   :  { %425 = vmatprep.subr.mxu1 %v197_v33  ;;  %334 = vmatprep.subr.mxu0 %v201_v36  ;;  %v109_v24 = vld [vmem:[#allocation5 + $0x178] sm:$0xff]  ;;  %v108_v25 = vld [vmem:[#allocation5 + $0x170] sm:$0xff]  ;;  %v103_v26 = vld [vmem:[#allocation5 + $0x148] sm:$0xff] }
  0x5c   :  { %426 = vmatpush2.msra.mxu1 %v196_v35  ;;  %335 = vmatpush2.msra.mxu0 %v200_v38  ;;  %v102_v27 = vld [vmem:[#allocation5 + $0x140] sm:$0xff]  ;;  %v97_v28 = vld [vmem:[#allocation5 + $0x118] sm:$0xff]  ;;  %v96_v29 = vld [vmem:[#allocation5 + $0x110] sm:$0xff] }
  0x5d   :  { %427 = vmatprep.subr.mxu1 %v191_v37  ;;  %336 = vmatprep.subr.mxu0 %v195_v40  ;;  %v91_v30 = vld [vmem:[#allocation5 + $0xe8] sm:$0xff]  ;;  %v90_v31 = vld [vmem:[#allocation5 + $0xe0] sm:$0xff]  ;;  %v85_v32 = vld [vmem:[#allocation5 + $0xb8] sm:$0xff] }
  0x5e   :  { %428 = vmatpush2.msra.mxu1 %v190_v39  ;;  %337 = vmatpush2.msra.mxu0 %v194_v42  ;;  %v84_v33 = vld [vmem:[#allocation5 + $0xb0] sm:$0xff]  ;;  %v79_v34 = vld [vmem:[#allocation5 + $0x88] sm:$0xff]  ;;  %v78_v35 = vld [vmem:[#allocation5 + $0x80] sm:$0xff] }
  0x5f   :  { %429 = vmatprep.subr.mxu1 %v185_v41  ;;  %338 = vmatprep.subr.mxu0 %v189_v44  ;;  %v73_v36 = vld [vmem:[#allocation5 + $0x58] sm:$0xff]  ;;  %v72_v37 = vld [vmem:[#allocation5 + $0x50] sm:$0xff]  ;;  %v67_v38 = vld [vmem:[#allocation5 + $0x28] sm:$0xff] }
  0x60   :  { %430 = vmatpush2.msra.mxu1 %v184_v43  ;;  %339 = vmatpush2.msra.mxu0 %v188_v46  ;;  %v66_v39 = vld [vmem:[#allocation5 + $0x20] sm:$0xff]  ;;  %v253_v40 = vld [vmem:[#allocation5 + $0x5f8] sm:$0xff]  ;;  %v252_v41 = vld [vmem:[#allocation5 + $0x5f0] sm:$0xff] }
  0x61   :  { %431 = vmatprep.subr.mxu1 %v179_v45  ;;  %439 = vmatprep.mubr.f32.mxu1 %v4873_v48  ;;  %v247_v42 = vld [vmem:[#allocation5 + $0x5c8] sm:$0xff]  ;;  %v246_v43 = vld [vmem:[#allocation5 + $0x5c0] sm:$0xff]  ;;  %v241_v44 = vld [vmem:[#allocation5 + $0x598] sm:$0xff] }
  0x62   :  { %432 = vmatpush2.msra.mxu1 %v178_v47  ;;  %340 = vmatprep.subr.mxu0 %v183_v50  ;;  %v240_v45 = vld [vmem:[#allocation5 + $0x590] sm:$0xff]  ;;  %v235_v46 = vld [vmem:[#allocation5 + $0x568] sm:$0xff]  ;;  %v234_v47 = vld [vmem:[#allocation5 + $0x560] sm:$0xff] }
  0x63   :  { %433 = vmatprep.subr.mxu1 %v173_v49  ;;  %341 = vmatpush2.msra.mxu0 %v182_v52  ;;  %v228_v49 = vld [vmem:[#allocation5 + $0x530] sm:$0xff]  ;;  %v223_v50 = vld [vmem:[#allocation5 + $0x508] sm:$0xff]  ;;  %v217_v52 = vld [vmem:[#allocation5 + $0x4d8] sm:$0xff] }
  0x64   :  { %434 = vmatpush2.msra.mxu1 %v172_v51  ;;  %342 = vmatprep.subr.mxu0 %v177_v54  ;;  %v222_v51 = vld [vmem:[#allocation5 + $0x500] sm:$0xff]  ;;  %v211_v54 = vld [vmem:[#allocation5 + $0x4a8] sm:$0xff] }
  0x65   :  { %435 = vmatprep.subr.mxu1 %v167_v53  ;;  %343 = vmatpush2.msra.mxu0 %v176_v56  ;;  %v216_v53 = vld [vmem:[#allocation5 + $0x4d0] sm:$0xff]  ;;  %v205_v56 = vld [vmem:[#allocation5 + $0x478] sm:$0xff] }
  0x66   :  { %436 = vmatpush2.msra.mxu1 %v166_v55  ;;  %344 = vmatprep.subr.mxu0 %v171_v58  ;;  %v210_v55 = vld [vmem:[#allocation5 + $0x4a0] sm:$0xff]  ;;  %v199_v58 = vld [vmem:[#allocation5 + $0x448] sm:$0xff] }
  0x67   :  { %437 = vmatprep.subr.mxu1 %v161_v57  ;;  %345 = vmatpush2.msra.mxu0 %v170_v60  ;;  %v204_v57 = vld [vmem:[#allocation5 + $0x470] sm:$0xff]  ;;  %v193_v60 = vld [vmem:[#allocation5 + $0x418] sm:$0xff] }
  0x68   :  { %438 = vmatpush2.msra.mxu1 %v160_v59  ;;  %346 = vmatprep.subr.mxu0 %v165_v62  ;;  %v198_v59 = vld [vmem:[#allocation5 + $0x440] sm:$0xff]  ;;  %v192_v62 = vld [vmem:[#allocation5 + $0x410] sm:$0xff] }
  0x69   :  { %440 = vmatmul.mubr.f32.vlgmr.msra.gmra.mxu1 %v4876_v61  ;;  %347 = vmatpush2.msra.mxu0 %v164_v0  ;;  %v187_v0 = vld [vmem:[#allocation5 + $0x3e8] sm:$0xff] }
  0x6a   :  { %445 = vmatprep.mubr.f32.mxu1 %v4878_v63  ;;  %348 = vmatprep.subr.mxu0 %v159_v1  ;;  %v186_v1 = vld [vmem:[#allocation5 + $0x3e0] sm:$0xff] }
  0x6b   :  { %350 = vmatprep.mubr.f32.mxu0 %v4873_v48  ;;  %349 = vmatpush2.msra.mxu0 %v158_v2  ;;  %v181_v2 = vld [vmem:[#allocation5 + $0x3b8] sm:$0xff] }
  0x6c   :  { %351 = vmatmul.mubr.f32.vlgmr.msra.gmra.mxu0 %v4876_v61  ;;  %464 = vmatprep.subr.mxu0 %v157_v5  ;;  %v180_v5 = vld [vmem:[#allocation5 + $0x3b0] sm:$0xff] }
  0x6d   :  { %446 = vmatmul.mubr.f32.gmra.mxu1 %v4882_v3  ;;  %356 = vmatprep.mubr.f32.mxu0 %v4878_v63 }
  0x6e   :  { %451 = vmatprep.mubr.f32.mxu1 %v4885_v4  ;;  %465 = vmatpush1.msra.mxu0 %v156_v6  ;;  %v175_v6 = vld [vmem:[#allocation5 + $0x388] sm:$0xff] }
  0x6f   :  { %466 = vmatprep.subr.mxu0 %v151_v9  ;;  %v174_v9 = vld [vmem:[#allocation5 + $0x380] sm:$0xff] }
  0x70   :  { %357 = vmatmul.mubr.f32.gmra.mxu0 %v4882_v3 }
  0x71   :  { %452 = vmatmul.mubr.f32.gmra.mxu1 %v4891_v7  ;;  %362 = vmatprep.mubr.f32.mxu0 %v4885_v4 }
  0x72   :  { %457 = vmatprep.mubr.f32.mxu1 %v4893_v8  ;;  %467 = vmatpush1.msra.mxu0 %v150_v10  ;;  %v169_v10 = vld [vmem:[#allocation5 + $0x358] sm:$0xff] }
  0x73   :  { %468 = vmatprep.subr.mxu0 %v145_v12  ;;  %v168_v12 = vld [vmem:[#allocation5 + $0x350] sm:$0xff] }
  0x74   :  { %363 = vmatmul.mubr.f32.gmra.mxu0 %v4891_v7 }
  0x75   :  { %458 = vmatmul.mubr.f32.gmra.mxu1 %v4898_v11  ;;  %368 = vmatprep.mubr.f32.mxu0 %v4893_v8 }
  0x76   :  { %469 = vmatpush1.msra.mxu0 %v144_v13  ;;  %v163_v13 = vld [vmem:[#allocation5 + $0x328] sm:$0xff] }
  0x77   :  { %470 = vmatprep.subr.mxu0 %v139_v14  ;;  %v162_v14 = vld [vmem:[#allocation5 + $0x320] sm:$0xff] }
  0x78   :  { %369 = vmatmul.mubr.f32.gmra.mxu0 %v4898_v11 }
  0x79   :  { %471 = vmatpush1.msra.mxu0 %v138_v15  ;;  %528 = vmatprep.mubr.f32.mxu0 %v4873_v48  ;;  %v229_v48 = vld [vmem:[#allocation5 + $0x538] sm:$0xff]  ;;  %v256_v15 = vlaneseq }
  0x7a   :  { %472 = vmatprep.subr.mxu0 %v133_v16 }
  0x7b   :  { %473 = vmatpush1.msra.mxu0 %v132_v17  ;;  %v4913_v16 = vshrl.u32 %v256_v15, 7 }
  0x7c   :  { %474 = vmatprep.subr.mxu0 %v127_v18  ;;  %v4916_v18 = vld [vmem:[#allocation7] sm:$0x3f] }
  0x7d   :  { %475 = vmatpush1.msra.mxu0 %v126_v19  ;;  %v266_v17 = vsub.s32 2, %v4913_v16 }
  0x7e   :  { %476 = vmatprep.subr.mxu0 %v121_v20 }
  0x7f   :  { %477 = vmatpush1.msra.mxu0 %v120_v21 }
  0x80   :  { %478 = vmatprep.subr.mxu0 %v115_v22 }
  0x81   :  { %479 = vmatpush1.msra.mxu0 %v114_v23 }
  0x82   :  { %480 = vmatprep.subr.mxu0 %v109_v24 }
  0x83   :  { %481 = vmatpush1.msra.mxu0 %v108_v25 }
  0x84   :  { %482 = vmatprep.subr.mxu0 %v103_v26 }
  0x85   :  { %483 = vmatpush1.msra.mxu0 %v102_v27 }
  0x86   :  { %484 = vmatprep.subr.mxu0 %v97_v28 }
  0x87   :  { %485 = vmatpush1.msra.mxu0 %v96_v29 }
  0x88   :  { %486 = vmatprep.subr.mxu0 %v91_v30 }
  0x89   :  { %487 = vmatpush1.msra.mxu0 %v90_v31 }
  0x8a   :  { %488 = vmatprep.subr.mxu0 %v85_v32 }
  0x8b   :  { %489 = vmatpush1.msra.mxu0 %v84_v33 }
  0x8c   :  { %490 = vmatprep.subr.mxu0 %v79_v34 }
  0x8d   :  { %491 = vmatpush1.msra.mxu0 %v78_v35 }
  0x8e   :  { %492 = vmatprep.subr.mxu0 %v73_v36 }
  0x8f   :  { %493 = vmatpush1.msra.mxu0 %v72_v37 }
  0x90   :  { %494 = vmatprep.subr.mxu0 %v67_v38 }
  0x91   :  { %495 = vmatpush1.msra.mxu0 %v66_v39 }
  0x92   :  { %496 = vmatprep.subr.mxu0 %v253_v40 }
  0x93   :  { %497 = vmatpush2.msra.mxu0 %v252_v41 }
  0x94   :  { %498 = vmatprep.subr.mxu0 %v247_v42 }
  0x95   :  { %499 = vmatpush2.msra.mxu0 %v246_v43 }
  0x96   :  { %500 = vmatprep.subr.mxu0 %v241_v44 }
  0x97   :  { %501 = vmatpush2.msra.mxu0 %v240_v45 }
  0x98   :  { %502 = vmatprep.subr.mxu0 %v235_v46 }
  0x99   :  { %503 = vmatpush2.msra.mxu0 %v234_v47 }
  0x9a   :  { %504 = vmatprep.subr.mxu0 %v229_v48 }
  0x9b   :  { %505 = vmatpush2.msra.mxu0 %v228_v49 }
  0x9c   :  { %506 = vmatprep.subr.mxu0 %v223_v50 }
  0x9d   :  { %507 = vmatpush2.msra.mxu0 %v222_v51 }
  0x9e   :  { %508 = vmatprep.subr.mxu0 %v217_v52 }
  0x9f   :  { %509 = vmatpush2.msra.mxu0 %v216_v53 }
  0xa0   :  { %510 = vmatprep.subr.mxu0 %v211_v54 }
  0xa1   :  { %511 = vmatpush2.msra.mxu0 %v210_v55 }
  0xa2   :  { %512 = vmatprep.subr.mxu0 %v205_v56 }
  0xa3   :  { %513 = vmatpush2.msra.mxu0 %v204_v57 }
  0xa4   :  { %514 = vmatprep.subr.mxu0 %v199_v58 }
  0xa5   :  { %515 = vmatpush2.msra.mxu0 %v198_v59 }
  0xa6   :  { %516 = vmatprep.subr.mxu0 %v193_v60 }
  0xa7   :  { %517 = vmatpush2.msra.mxu0 %v192_v62 }
  0xa8   :  { %518 = vmatprep.subr.mxu0 %v187_v0 }
  0xa9   :  { %519 = vmatpush2.msra.mxu0 %v186_v1 }
  0xaa   :  { %520 = vmatprep.subr.mxu0 %v181_v2 }
  0xab   :  { %521 = vmatpush2.msra.mxu0 %v180_v5 }
  0xac   :  { %522 = vmatprep.subr.mxu0 %v175_v6 }
  0xad   :  { %523 = vmatpush2.msra.mxu0 %v174_v9  ;;  %v274_v9 = vsub.s32 4, %v4913_v16 }
  0xae   :  { %524 = vmatprep.subr.mxu0 %v169_v10 }
  0xaf   :  { %525 = vmatpush2.msra.mxu0 %v168_v12  ;;  %v278_v12 = vsub.s32 5, %v4913_v16 }
  0xb0   :  { %526 = vmatprep.subr.mxu0 %v163_v13  ;;  %v5024_v13 = vrot.slane %v4916_v18, %v274_v9 }
  0xb1   :  { %527 = vmatpush2.msra.mxu0 %v162_v14  ;;  %v5029_v15 = vrot.slane %v4916_v18, %v278_v12 }
  0xb2   :  { %529 = vmatmul.mubr.f32.vlgmr.msra.gmra.mxu0 %v4876_v61  ;;  %v270_v61 = vsub.s32 3, %v4913_v16 }
  0xb3   :  { %534 = vmatprep.mubr.f32.mxu0 %v4878_v63  ;;  %v267_v63 = vrot.slane %v4916_v18, %v266_v17 }
  0xb6   :  { %535 = vmatmul.mubr.f32.gmra.mxu0 %v4882_v3  ;;  %v258_v3 = vsub.s32 0, %v4913_v16 }
  0xb7   :  { %540 = vmatprep.mubr.f32.mxu0 %v4885_v4  ;;  %v271_v4 = vrot.slane %v4916_v18, %v270_v61 }
  0xb8   :  { %v259_v20 = vrot.slane %v4916_v18, %v258_v3 }
  0xba   :  { %541 = vmatmul.mubr.f32.gmra.mxu0 %v4891_v7 }
  0xbb   :  { %546 = vmatprep.mubr.f32.mxu0 %v4893_v8  ;;  %v262_v8 = vsub.s32 1, %v4913_v16 }
  0xbd   :  { %v263_v24 = vrot.slane %v4916_v18, %v262_v8  ;;  %v4838_v8 = vmov 1983009808  }
  0xbe   :  { %547 = vmatmul.mubr.f32.gmra.mxu0 %v4898_v11 }
 0x129   :  { %v441_v7 = vpop.f32.mrf.mxu1 }
 0x12a   :  { %v4923_v19 = vadd.f32 %v441_v7, %v267_v63 }
 0x12b   :  { %v443_v11 = vpop.f32.mrf.mxu1 }
 0x12c   :  { %v4926_v21 = vadd.f32 %v443_v11, %v271_v4  ;;  %1133 = vrot.lane.b32.xlu1 %v4923_v19, %s4837_s0  ;;  %v352_v23 = vpop.f32.mrf.mxu0  ;;  %v588_v11 = vunpack.c.l.s4 %v4838_v8 }
 0x12d   :  { %v447_v22 = vpop.f32.mrf.mxu1  ;;  %v4937_v29 = vadd.f32 %v352_v23, %v259_v20 }
 0x12e   :  { %v1161_v25 = vcombine.low %v4923_v19, %v4926_v21  ;;  %v1162_v26 = vcombine.high %v4923_v19, %v4926_v21  ;;  %v4935_v27 = vadd.f32 %v447_v22, %v267_v63  ;;  %v354_v30 = vpop.f32.mrf.mxu0  ;;  %v589_v23 = vunpack.c.0.s8 %v588_v11 }
 0x12f   :  { %v449_v28 = vpop.f32.mrf.mxu1  ;;  %v4945_v32 = vadd.f32 %v354_v30, %v263_v24 }
 0x130   :  { %v4939_v31 = vadd.f32 %v449_v28, %v271_v4  ;;  %1135 = vrot.lane.b32.xlu0 %v4935_v27, %s4837_s0  ;;  %1149 = vrot.lane.b32.xlu1 %v4926_v21, %s4837_s0  ;;  %v358_v33 = vpop.f32.mrf.mxu0  ;;  %v5051_v30 = vsub.s32 %v589_v23, %v4913_v16 }
 0x131   :  { %v453_v34 = vpop.f32.mrf.mxu1  ;;  %v4951_v37 = vadd.f32 %v358_v33, %v259_v20  ;;  %v585_v38 = vcombine.low %v4937_v29, %v4945_v32  ;;  %v586_v39 = vcombine.high %v4937_v29, %v4945_v32 }
 0x132   :  { %v1229_v35 = vcombine.low %v4935_v27, %v4939_v31  ;;  %v1230_v36 = vcombine.high %v4935_v27, %v4939_v31  ;;  %v360_v40 = vpop.f32.mrf.mxu0  ;;  %v4963_v43 = vadd.f32 %v453_v34, %v267_v63 }
 0x133   :  { %v455_v41 = vpop.f32.mrf.mxu1  ;;  %v4961_v42 = vadd.f32 %v360_v40, %v263_v24  ;;  %v5082_v19 = vrot.slane %v586_v39, %v5051_v30 }
 0x134   :  { %1151 = vrot.lane.b32.xlu0 %v4939_v31, %s4837_s0  ;;  %573 = vrot.lane.b32.xlu1 %v4945_v32, %s4837_s0  ;;  %v4965_v44 = vadd.f32 %v455_v41, %v271_v4  ;;  %v364_v46 = vpop.f32.mrf.mxu0  ;;  %v1169_v41 = vrot.slane %v1161_v25, %v5051_v30  ;;  %v5076_v25 = vrot.slane %v585_v38, %v5051_v30 }
 0x135   :  { %v459_v45 = vpop.f32.mrf.mxu1  ;;  %v653_v47 = vcombine.low %v4951_v37, %v4961_v42  ;;  %v654_v48 = vcombine.high %v4951_v37, %v4961_v42  ;;  %v4983_v55 = vadd.f32 %v364_v46, %v259_v20 }
 0x136   :  { %v1297_v49 = vcombine.low %v4963_v43, %v4965_v44  ;;  %v1298_v50 = vcombine.high %v4963_v43, %v4965_v44  ;;  %v366_v52 = vpop.f32.mrf.mxu0  ;;  %v4977_v53 = vadd.f32 %v459_v45, %v267_v63  ;;  %v1176_v45 = vrot.slane %v1162_v26, %v5051_v30 }
 0x137   :  { %v461_v51 = vpop.f32.mrf.mxu1  ;;  %v4985_v56 = vadd.f32 %v366_v52, %v263_v24  ;;  %v1244_v52 = vrot.slane %v1230_v36, %v5051_v30  ;;  %v5088_v21 = vrot.slane %v653_v47, %v5051_v30  ;;  %v5094_v26 = vrot.slane %v654_v48, %v5051_v30 }
 0x138   :  { %557 = vrot.lane.b32.xlu0 %v4937_v29, %s4837_s0  ;;  %575 = vrot.lane.b32.xlu1 %v4961_v42, %s4837_s0  ;;  %v4981_v54 = vadd.f32 %v461_v51, %v271_v4  ;;  %v370_v57 = vpop.f32.mrf.mxu0  ;;  %v5102_v29 = vrot.slane %v1297_v49, %v5051_v30  ;;  %v5108_v32 = vrot.slane %v1298_v50, %v5051_v30 }
 0x139   :  { %v721_v60 = vcombine.low %v4983_v55, %v4985_v56  ;;  %v722_v62 = vcombine.high %v4983_v55, %v4985_v56  ;;  %v4999_v1 = vadd.f32 %v370_v57, %v259_v20  ;;  %v4839_v20 = vmov 1934713408  }
 0x13a   :  { %v1365_v58 = vcombine.low %v4977_v53, %v4981_v54  ;;  %v1366_v59 = vcombine.high %v4977_v53, %v4981_v54  ;;  %v372_v0 = vpop.f32.mrf.mxu0  ;;  %v620_v22 = vunpack.c.l.s4 %v4839_v20 }
 0x13b   :  { %v5001_v2 = vadd.f32 %v372_v0, %v263_v24  ;;  %v5120_v49 = vrot.slane %v721_v60, %v5051_v30 }
 0x13c   :  { %559 = vrot.lane.b32.xlu0 %v4951_v37, %s4837_s0  ;;  %1155 = vrot.lane.b32.xlu1 %v4981_v54, %s4837_s0  ;;  %v621_v24 = vunpack.c.0.s8 %v620_v22  ;;  %v5114_v36 = vrot.slane %v1366_v59, %v5051_v30 }
 0x13d   :  { %v789_v5 = vcombine.low %v4999_v1, %v5001_v2  ;;  %v790_v6 = vcombine.high %v4999_v1, %v5001_v2 }
 0x13e   :  { %v5054_v33 = vsub.s32 %v621_v24, %v4913_v16  ;;  %v1237_v16 = vrot.slane %v1229_v35, %v5051_v30  ;;  %v5111_v35 = vrot.slane %v1365_v58, %v5051_v30 }
 0x13f   :  { %v5136_v59 = vrot.slane %v789_v5, %v5051_v30 }
 0x140   :  { %1139 = vrot.lane.b32.xlu0 %v4977_v53, %s4837_s0  ;;  %1153 = vrot.lane.b32.xlu1 %v4965_v44, %s4837_s0 }
 0x144   :  { %1137 = vrot.lane.b32.xlu0 %v4963_v43, %s4837_s0  ;;  %577 = vrot.lane.b32.xlu1 %v4985_v56, %s4837_s0  ;;  %v5126_v43 = vrot.slane %v722_v62, %v5051_v30 }
 0x148   :  { %561 = vrot.lane.b32.xlu0 %v4983_v55, %s4837_s0  ;;  %579 = vrot.lane.b32.xlu1 %v5001_v2, %s4837_s0  ;;  %v5142_v55 = vrot.slane %v790_v6, %v5051_v30 }
 0x14c   :  { %563 = vrot.lane.b32.xlu0 %v4999_v1, %s4837_s0 }
 0x172   :  { %v530_v10 = vpop.f32.mrf.mxu0 }
 0x173   :  { %v5032_v17 = vadd.f32 %v530_v10, %v5024_v13 }
 0x174   :  { %v5026_v14 = vpop.f32.mrf.mxu0 }
 0x175   :  { %1709 = vrot.lane.b32.xlu1 %v5032_v17, %s4837_s0 }
 0x176   :  { %v536_v61 = vpop.f32.mrf.mxu0 }
 0x177   :  { %v5035_v63 = vadd.f32 %v536_v61, %v5024_v13 }
 0x178   :  { %v538_v3 = vpop.f32.mrf.mxu0 }
 0x179   :  { %v5040_v4 = vadd.f32 %v538_v3, %v5029_v15  ;;  %1711 = vrot.lane.b32.xlu1 %v5035_v63, %s4837_s0 }
 0x17b   :  { %1727 = vrot.lane.b32.xlu0 %v5040_v4, %s4837_s0 }
 0x19e   :  { %v1134_v28 = vpop.permute.xlu1 %1133 }
 0x1a2   :  { %v1136_v34 = vpop.permute.xlu0 %1135  ;;  %v1150_v40 = vpop.permute.xlu1 %1149 }
 0x1a3   :  { %v1177_v46 = vcombine.low %v1134_v28, %v1150_v40  ;;  %v1178_v51 = vcombine.high %v1134_v28, %v1150_v40 }
 0x1a5   :  { %v1185_v27 = vrot.slane %v1177_v46, %v5051_v30  ;;  %v1192_v31 = vrot.slane %v1178_v51, %v5051_v30 }
 0x1a6   :  { %v1152_v37 = vpop.permute.xlu0 %1151  ;;  %v574_v38 = vpop.permute.xlu1 %573 }
 0x1a7   :  { %v1193_v39 = vcombine.low %v1169_v41, %v1185_v27  ;;  %v1194_v42 = vcombine.high %v1169_v41, %v1185_v27  ;;  %v1209_v47 = vcombine.low %v1176_v45, %v1192_v31  ;;  %v1210_v48 = vcombine.high %v1176_v45, %v1192_v31 }
 0x1a8   :  { %v1245_v44 = vcombine.low %v1136_v34, %v1152_v37  ;;  %v1246_v50 = vcombine.high %v1136_v34, %v1152_v37 }
 0x1a9   :  { %v1201_v53 = vrot.slane %v1193_v39, %v5054_v33  ;;  %v1208_v54 = vrot.slane %v1194_v42, %v5054_v33  ;;  %v1217_v57 = vrot.slane %v1209_v47, %v5054_v33  ;;  %v1224_v58 = vrot.slane %v1210_v48, %v5054_v33 }
 0x1aa   :  { %v1253_v56 = vrot.slane %v1245_v44, %v5051_v30  ;;  %v1260_v60 = vrot.slane %v1246_v50, %v5051_v30  ;;  %v558_v62 = vpop.permute.xlu0 %557  ;;  %v576_v11 = vpop.permute.xlu1 %575 }
 0x1ab   :  { %v1433_v0 = vcombine.low %v1201_v53, %v1208_v54  ;;  %v4421_v9 = vcombine.high %v1201_v53, %v1208_v54  ;;  %v1449_v10 = vcombine.low %v1217_v57, %v1224_v58  ;;  %v4422_v12 = vcombine.high %v1217_v57, %v1224_v58 }
 0x1ac   :  { %v1261_v61 = vcombine.low %v1237_v16, %v1253_v56  ;;  %v1262_v3 = vcombine.high %v1237_v16, %v1253_v56  ;;  %v1277_v8 = vcombine.low %v1244_v52, %v1260_v60  ;;  %v1278_v5 = vcombine.high %v1244_v52, %v1260_v60 }
 0x1ad   :  { %v5147_v20 = vrot.slane %v1433_v0, %v5051_v30  ;;  %v5150_v1 = vrot.slane %v4421_v9, %v5051_v30  ;;  %v5153_v2 = vrot.slane %v1449_v10, %v5051_v30  ;;  %v5156_v6 = vrot.slane %v4422_v12, %v5051_v30 }
 0x1ae   :  { %v1269_v22 = vrot.slane %v1261_v61, %v5054_v33  ;;  %v1276_v23 = vrot.slane %v1262_v3, %v5054_v33  ;;  %v1285_v24 = vrot.slane %v1277_v8, %v5054_v33  ;;  %v1292_v28 = vrot.slane %v1278_v5, %v5054_v33  ;;  %v560_v34 = vpop.permute.xlu0 %559  ;;  %v1156_v50 = vpop.permute.xlu1 %1155 }
 0x1af   :  { %v601_v40 = vcombine.low %v558_v62, %v574_v38  ;;  %v602_v41 = vcombine.high %v558_v62, %v574_v38  ;;  %v669_v45 = vcombine.low %v560_v34, %v576_v11  ;;  %v670_v46 = vcombine.high %v560_v34, %v576_v11 }
 0x1b0   :  { %v1501_v51 = vcombine.low %v1269_v22, %v1276_v23  ;;  %v4423_v16 = vcombine.high %v1269_v22, %v1276_v23  ;;  %v1517_v52 = vcombine.low %v1285_v24, %v1292_v28  ;;  %v4424_v27 = vcombine.high %v1285_v24, %v1292_v28 }
 0x1b1   :  { %v609_v31 = vrot.slane %v601_v40, %v5051_v30  ;;  %v616_v37 = vrot.slane %v602_v41, %v5051_v30  ;;  %v677_v39 = vrot.slane %v669_v45, %v5051_v30  ;;  %v684_v42 = vrot.slane %v670_v46, %v5051_v30 }
 0x1b2   :  { %v5167_v47 = vrot.slane %v1501_v51, %v5051_v30  ;;  %v5170_v48 = vrot.slane %v4423_v16, %v5051_v30  ;;  %v5173_v38 = vrot.slane %v1517_v52, %v5051_v30  ;;  %v5176_v44 = vrot.slane %v4424_v27, %v5051_v30  ;;  %v1140_v53 = vpop.permute.xlu0 %1139  ;;  %v1154_v40 = vpop.permute.xlu1 %1153 }
 0x1b3   :  { %v617_v54 = vcombine.low %v5076_v25, %v609_v31  ;;  %v618_v57 = vcombine.high %v5076_v25, %v609_v31  ;;  %v633_v58 = vcombine.low %v5082_v19, %v616_v37  ;;  %v634_v56 = vcombine.high %v5082_v19, %v616_v37 }
 0x1b4   :  { %v685_v60 = vcombine.low %v5088_v21, %v677_v39  ;;  %v686_v62 = vcombine.high %v5088_v21, %v677_v39  ;;  %v701_v0 = vcombine.low %v5094_v26, %v684_v42  ;;  %v702_v9 = vcombine.high %v5094_v26, %v684_v42 }
 0x1b5   :  { %v625_v10 = vrot.slane %v617_v54, %v5054_v33  ;;  %v632_v12 = vrot.slane %v618_v57, %v5054_v33  ;;  %v641_v61 = vrot.slane %v633_v58, %v5054_v33  ;;  %v648_v25 = vrot.slane %v634_v56, %v5054_v33 }
 0x1b6   :  { %v693_v3 = vrot.slane %v685_v60, %v5054_v33  ;;  %v700_v19 = vrot.slane %v686_v62, %v5054_v33  ;;  %v709_v8 = vrot.slane %v701_v0, %v5054_v33  ;;  %v716_v21 = vrot.slane %v702_v9, %v5054_v33  ;;  %v1138_v41 = vpop.permute.xlu0 %1137 }
 0x1b7   :  { %v857_v5 = vcombine.low %v625_v10, %v632_v12  ;;  %v4413_v11 = vcombine.high %v625_v10, %v632_v12  ;;  %v873_v22 = vcombine.low %v641_v61, %v648_v25  ;;  %v4414_v26 = vcombine.high %v641_v61, %v648_v25 }
 0x1b8   :  { %v925_v23 = vcombine.low %v693_v3, %v700_v19  ;;  %v4415_v24 = vcombine.high %v693_v3, %v700_v19  ;;  %v941_v28 = vcombine.low %v709_v8, %v716_v21  ;;  %v4416_v34 = vcombine.high %v709_v8, %v716_v21 }
 0x1b9   :  { %v5195_v45 = vrot.slane %v857_v5, %v5051_v30  ;;  %v5198_v46 = vrot.slane %v4413_v11, %v5051_v30  ;;  %v5201_v51 = vrot.slane %v873_v22, %v5051_v30  ;;  %v5204_v16 = vrot.slane %v4414_v26, %v5051_v30 }
 0x1ba   :  { %v5207_v52 = vrot.slane %v925_v23, %v5051_v30  ;;  %v5210_v27 = vrot.slane %v4415_v24, %v5051_v30  ;;  %v5213_v31 = vrot.slane %v941_v28, %v5051_v30  ;;  %v5216_v37 = vrot.slane %v4416_v34, %v5051_v30  ;;  %v578_v23 = vpop.permute.xlu1 %577  ;;  %v562_v24 = vpop.permute.xlu0 %561 }
 0x1bb   :  { %v1381_v39 = vcombine.low %v1140_v53, %v1156_v50  ;;  %v1382_v42 = vcombine.high %v1140_v53, %v1156_v50  ;;  %v1313_v54 = vcombine.low %v1138_v41, %v1154_v40  ;;  %v1314_v57 = vcombine.high %v1138_v41, %v1154_v40 }
 0x1bc   :  { %v957_v58 = vcombine.low %v5207_v52, %v5210_v27  ;;  %v958_v56 = vcombine.high %v5207_v52, %v5210_v27  ;;  %v973_v60 = vcombine.low %v5213_v31, %v5216_v37  ;;  %v974_v62 = vcombine.high %v5213_v31, %v5216_v37 }
 0x1bd   :  { %v1389_v0 = vrot.slane %v1381_v39, %v5051_v30  ;;  %v1396_v9 = vrot.slane %v1382_v42, %v5051_v30  ;;  %v1321_v50 = vrot.slane %v1313_v54, %v5051_v30  ;;  %v1328_v53 = vrot.slane %v1314_v57, %v5051_v30 }
 0x1be   :  { %v5231_v10 = vrot.slane %v957_v58, %v5054_v33  ;;  %v5234_v12 = vrot.slane %v973_v60, %v5054_v33  ;;  %v1533_v61 = vcombine.low %v5167_v47, %v5170_v48  ;;  %v1549_v25 = vcombine.low %v5173_v38, %v5176_v44 }
 0x1bf   :  { %v1397_v3 = vcombine.low %v5111_v35, %v1389_v0  ;;  %v1398_v19 = vcombine.high %v5111_v35, %v1389_v0  ;;  %v1413_v8 = vcombine.low %v5114_v36, %v1396_v9  ;;  %v1414_v21 = vcombine.high %v5114_v36, %v1396_v9 }
 0x1c0   :  { %v1329_v5 = vcombine.low %v5102_v29, %v1321_v50  ;;  %v1330_v11 = vcombine.high %v5102_v29, %v1321_v50  ;;  %v1345_v22 = vcombine.low %v5108_v32, %v1328_v53  ;;  %v1346_v26 = vcombine.high %v5108_v32, %v1328_v53 }
 0x1c1   :  { %v1405_v28 = vrot.slane %v1397_v3, %v5054_v33  ;;  %v1412_v34 = vrot.slane %v1398_v19, %v5054_v33  ;;  %v1421_v35 = vrot.slane %v1413_v8, %v5054_v33  ;;  %v1428_v40 = vrot.slane %v1414_v21, %v5054_v33 }
 0x1c2   :  { %v1337_v36 = vrot.slane %v1329_v5, %v5054_v33  ;;  %v1344_v41 = vrot.slane %v1330_v11, %v5054_v33  ;;  %v1353_v29 = vrot.slane %v1345_v22, %v5054_v33  ;;  %v1360_v39 = vrot.slane %v1346_v26, %v5054_v33  ;;  %v580_v22 = vpop.permute.xlu1 %579  ;;  %v564_v26 = vpop.permute.xlu0 %563 }
 0x1c3   :  { %v1637_v32 = vcombine.low %v1405_v28, %v1412_v34  ;;  %v4427_v42 = vcombine.high %v1405_v28, %v1412_v34  ;;  %v1653_v54 = vcombine.low %v1421_v35, %v1428_v40  ;;  %v4428_v57 = vcombine.high %v1421_v35, %v1428_v40 }
 0x1c4   :  { %v1569_v58 = vcombine.low %v1337_v36, %v1344_v41  ;;  %v4425_v60 = vcombine.high %v1337_v36, %v1344_v41  ;;  %v1585_v0 = vcombine.low %v1353_v29, %v1360_v39  ;;  %v4426_v9 = vcombine.high %v1353_v29, %v1360_v39 }
 0x1c5   :  { %v5257_v50 = vrot.slane %v1637_v32, %v5051_v30  ;;  %v5260_v53 = vrot.slane %v4427_v42, %v5051_v30  ;;  %v5263_v3 = vrot.slane %v1653_v54, %v5051_v30  ;;  %v5266_v19 = vrot.slane %v4428_v57, %v5051_v30 }
 0x1c6   :  { %v5269_v8 = vrot.slane %v1569_v58, %v5051_v30  ;;  %v5272_v21 = vrot.slane %v4425_v60, %v5051_v30  ;;  %v5275_v5 = vrot.slane %v1585_v0, %v5051_v30  ;;  %v5278_v11 = vrot.slane %v4426_v9, %v5051_v30 }
 0x1c7   :  { %v1541_v28 = vrot.slane %v1533_v61, %v5054_v33  ;;  %v1557_v34 = vrot.slane %v1549_v25, %v5054_v33  ;;  %v737_v35 = vcombine.low %v562_v24, %v578_v23  ;;  %v738_v40 = vcombine.high %v562_v24, %v578_v23 }
 0x1c8   :  { %v1465_v36 = vcombine.low %v5147_v20, %v5150_v1  ;;  %v1481_v41 = vcombine.low %v5153_v2, %v5156_v6  ;;  %v889_v29 = vcombine.low %v5195_v45, %v5198_v46  ;;  %v905_v39 = vcombine.low %v5201_v51, %v5204_v16 }
 0x1c9   :  { %v1565_v32 = vcombine.low %v1541_v28, %v1557_v34  ;;  %v745_v42 = vrot.slane %v737_v35, %v5051_v30  ;;  %v752_v61 = vrot.slane %v738_v40, %v5051_v30  ;;  %v805_v25 = vcombine.low %v564_v26, %v580_v22 }
 0x1ca   :  { %v1473_v23 = vrot.slane %v1465_v36, %v5054_v33  ;;  %v1489_v24 = vrot.slane %v1481_v41, %v5054_v33  ;;  %v897_v54 = vrot.slane %v889_v29, %v5054_v33  ;;  %v913_v57 = vrot.slane %v905_v39, %v5054_v33 }
 0x1cb   :  { %4557 = vmatprep.subr.msk.mxu1 %vm2281_vm0, %v1565_v32  ;;  %v753_v58 = vcombine.low %v5120_v49, %v745_v42  ;;  %v754_v60 = vcombine.high %v5120_v49, %v745_v42  ;;  %v769_v0 = vcombine.low %v5126_v43, %v752_v61  ;;  %v770_v9 = vcombine.high %v5126_v43, %v752_v61 }
 0x1cc   :  { %4558 = vmatpush3.xpose.msk.msra.mxu1 %vm2281_vm0, %v1565_v32  ;;  %v1497_v35 = vcombine.low %v1473_v23, %v1489_v24  ;;  %v921_v40 = vcombine.low %v897_v54, %v913_v57  ;;  %v806_v36 = vcombine.high %v564_v26, %v580_v22  ;;  %v813_v41 = vrot.slane %v805_v25, %v5051_v30 }
 0x1cd   :  { %v761_v29 = vrot.slane %v753_v58, %v5054_v33  ;;  %v768_v39 = vrot.slane %v754_v60, %v5054_v33  ;;  %v777_v18 = vrot.slane %v769_v0, %v5054_v33  ;;  %v784_v7 = vrot.slane %v770_v9, %v5054_v33 }
 0x1ce   :  { %4559 = vmatprep.subr.msk.mxu1 %vm2281_vm0, %v1497_v35  ;;  %4561 = vmatprep.mubr.msk.f32.mxu1 %vm2281_vm0, %v921_v40  ;;  %v820_v49 = vrot.slane %v806_v36, %v5051_v30  ;;  %v821_v43 = vcombine.low %v5136_v59, %v813_v41  ;;  %v822_v22 = vcombine.high %v5136_v59, %v813_v41 }
 0x1cf   :  { %v993_v26 = vcombine.low %v761_v29, %v768_v39  ;;  %v4417_v32 = vcombine.high %v761_v29, %v768_v39  ;;  %v1009_v42 = vcombine.low %v777_v18, %v784_v7  ;;  %v4418_v61 = vcombine.high %v777_v18, %v784_v7 }
 0x1d0   :  { %4560 = vmatpush3.xpose.msk.msra.mxu1 %vm2281_vm0, %v1497_v35  ;;  %v829_v25 = vrot.slane %v821_v43, %v5054_v33  ;;  %v836_v58 = vrot.slane %v822_v22, %v5054_v33  ;;  %v837_v60 = vcombine.low %v5142_v55, %v820_v49  ;;  %v838_v0 = vcombine.high %v5142_v55, %v820_v49 }
 0x1d1   :  { %v5318_v9 = vrot.slane %v993_v26, %v5051_v30  ;;  %v5321_v40 = vrot.slane %v4417_v32, %v5051_v30  ;;  %v5324_v59 = vrot.slane %v1009_v42, %v5051_v30  ;;  %v5327_v7 = vrot.slane %v4418_v61, %v5051_v30 }
 0x1d2   :  { %v845_v18 = vrot.slane %v837_v60, %v5054_v33  ;;  %v852_v35 = vrot.slane %v838_v0, %v5054_v33  ;;  %v1061_v36 = vcombine.low %v829_v25, %v836_v58  ;;  %v4419_v41 = vcombine.high %v829_v25, %v836_v58 }
 0x1d3   :  { %v1566_v29 = vcombine.high %v1541_v28, %v1557_v34  ;;  %v989_v55 = vcombine.low %v5231_v10, %v5234_v12  ;;  %v922_v39 = vcombine.high %v897_v54, %v913_v57  ;;  %v1498_v49 = vcombine.high %v1473_v23, %v1489_v24 }
 0x1d4   :  { %v5334_v43 = vrot.slane %v1061_v36, %v5051_v30  ;;  %v5337_v22 = vrot.slane %v4419_v41, %v5051_v30  ;;  %v1077_v26 = vcombine.low %v845_v18, %v852_v35  ;;  %v4420_v32 = vcombine.high %v845_v18, %v852_v35 }
 0x1d5   :  { %4564 = vmatprep.subr.msk.mxu1 %vm2281_vm0, %v1566_v29  ;;  %4562 = vmatmul.mubr.msk.f32.vlgmr.msra.gmra.mxu1 %vm2281_vm0, %v989_v55  ;;  %v1534_v28 = vcombine.high %v5167_v47, %v5170_v48  ;;  %v1550_v34 = vcombine.high %v5173_v38, %v5176_v44  ;;  %v990_v23 = vcombine.high %v5231_v10, %v5234_v12 }
 0x1d6   :  { %v5348_v24 = vrot.slane %v1077_v26, %v5051_v30  ;;  %v5351_v54 = vrot.slane %v4420_v32, %v5051_v30  ;;  %v1093_v57 = vcombine.low %v5334_v43, %v5337_v22  ;;  %v1094_v42 = vcombine.high %v5334_v43, %v5337_v22  ;;  %4565 = vmatpush3.xpose.msk.msra.mxu1 %vm2281_vm0, %v1566_v29 }
 0x1d7   :  { %4568 = vmatprep.mubr.msk.f32.mxu1 %vm2281_vm0, %v922_v39  ;;  %4566 = vmatprep.subr.msk.mxu1 %vm2281_vm0, %v1498_v49  ;;  %v1548_v47 = vrot.slane %v1534_v28, %v5054_v33  ;;  %v1564_v48 = vrot.slane %v1550_v34, %v5054_v33  ;;  %v890_v38 = vcombine.high %v5195_v45, %v5198_v46 }
 0x1d8   :  { %v1109_v44 = vcombine.low %v5348_v24, %v5351_v54  ;;  %v1110_v10 = vcombine.high %v5348_v24, %v5351_v54  ;;  %v906_v12 = vcombine.high %v5201_v51, %v5204_v16  ;;  %v1466_v61 = vcombine.high %v5147_v20, %v5150_v1 }
 0x1d9   :  { %v1567_v25 = vcombine.low %v1548_v47, %v1564_v48  ;;  %v904_v58 = vrot.slane %v890_v38, %v5054_v33  ;;  %v1482_v60 = vcombine.high %v5153_v2, %v5156_v6  ;;  %v1568_v0 = vcombine.high %v1548_v47, %v1564_v48 }
 0x1da   :  { %4567 = vmatpush3.xpose.msk.msra.mxu1 %vm2281_vm0, %v1498_v49  ;;  %v920_v45 = vrot.slane %v906_v12, %v5054_v33  ;;  %v1480_v46 = vrot.slane %v1466_v61, %v5054_v33  ;;  %v5382_v51 = vrot.slane %v958_v56, %v5054_v33  ;;  %v5388_v20 = vrot.slane %v974_v62, %v5054_v33 }
 0x1db   :  { %4571 = vmatprep.subr.msk.mxu1 %vm2281_vm0, %v1567_v25  ;;  %v1496_v1 = vrot.slane %v1482_v60, %v5054_v33  ;;  %v1669_v2 = vcombine.low %v5257_v50, %v5260_v53  ;;  %v1685_v6 = vcombine.low %v5263_v3, %v5266_v19  ;;  %v1025_v16 = vcombine.low %v5318_v9, %v5321_v40 }
 0x1dc   :  { %v923_v52 = vcombine.low %v904_v58, %v920_v45  ;;  %v991_v27 = vcombine.low %v5382_v51, %v5388_v20  ;;  %v924_v31 = vcombine.high %v904_v58, %v920_v45  ;;  %v992_v37 = vcombine.high %v5382_v51, %v5388_v20 }
 0x1dd   :  { %4569 = vmatmul.mubr.msk.f32.vlgmr.msra.gmra.mxu1 %vm2281_vm0, %v990_v23  ;;  %v1499_v56 = vcombine.low %v1480_v46, %v1496_v1  ;;  %v1500_v62 = vcombine.high %v1480_v46, %v1496_v1  ;;  %v1677_v18 = vrot.slane %v1669_v2, %v5054_v33  ;;  %v1693_v35 = vrot.slane %v1685_v6, %v5054_v33 }
 0x1de   :  { %4572 = vmatpush3.xpose.msk.msra.mxu1 %vm2281_vm0, %v1567_v25  ;;  %4575 = vmatprep.mubr.msk.f32.mxu1 %vm2281_vm0, %v923_v52  ;;  %v1033_v36 = vrot.slane %v1025_v16, %v5054_v33  ;;  %v1041_v41 = vcombine.low %v5324_v59, %v5327_v7  ;;  %v1601_v29 = vcombine.low %v5269_v8, %v5272_v21 }
 0x1df   :  { %4573 = vmatprep.subr.msk.mxu1 %vm2281_vm0, %v1499_v56  ;;  %v1701_v55 = vcombine.low %v1677_v18, %v1693_v35  ;;  %v1617_v39 = vcombine.low %v5275_v5, %v5278_v11  ;;  %v1702_v49 = vcombine.high %v1677_v18, %v1693_v35  ;;  %v1101_v26 = vrot.slane %v1093_v57, %v5054_v33 }
 0x1e0   :  { %v1049_v32 = vrot.slane %v1041_v41, %v5054_v33  ;;  %v1609_v28 = vrot.slane %v1601_v29, %v5054_v33  ;;  %v1117_v34 = vrot.slane %v1109_v44, %v5054_v33  ;;  %v1670_v23 = vcombine.high %v5257_v50, %v5260_v53 }
 0x1e1   :  { %v1625_v24 = vrot.slane %v1617_v39, %v5054_v33  ;;  %v1686_v54 = vcombine.high %v5263_v3, %v5266_v19  ;;  %v1026_v47 = vcombine.high %v5318_v9, %v5321_v40  ;;  %v1042_v57 = vcombine.high %v5324_v59, %v5327_v7 }
 0x1e2   :  { %4574 = vmatpush3.xpose.msk.msra.mxu1 %vm2281_vm0, %v1499_v56  ;;  %v1057_v48 = vcombine.low %v1033_v36, %v1049_v32  ;;  %v1125_v38 = vcombine.low %v1101_v26, %v1117_v34  ;;  %v1058_v12 = vcombine.high %v1033_v36, %v1049_v32  ;;  %v1684_v44 = vrot.slane %v1670_v23, %v5054_v33 }
 0x1e3   :  { %4578 = vmatprep.subr.msk.mxu1 %vm2281_vm0, %v1568_v0  ;;  %v1633_v50 = vcombine.low %v1609_v28, %v1625_v24  ;;  %v1634_v53 = vcombine.high %v1609_v28, %v1625_v24  ;;  %v1700_v61 = vrot.slane %v1686_v54, %v5054_v33  ;;  %v1126_v3 = vcombine.high %v1101_v26, %v1117_v34 }
 0x1e4   :  { %v1040_v19 = vrot.slane %v1026_v47, %v5054_v33  ;;  %v1056_v9 = vrot.slane %v1042_v57, %v5054_v33  ;;  %v1602_v40 = vcombine.high %v5269_v8, %v5272_v21  ;;  %v1618_v59 = vcombine.high %v5275_v5, %v5278_v11 }
 0x1e5   :  { %4576 = vmatmul.mubr.msk.f32.vlgmr.msra.gmra.mxu1 %vm2281_vm0, %v991_v27  ;;  %v1703_v7 = vcombine.low %v1684_v44, %v1700_v61  ;;  %v1704_v25 = vcombine.high %v1684_v44, %v1700_v61  ;;  %v1108_v58 = vrot.slane %v1094_v42, %v5054_v33  ;;  %v1124_v60 = vrot.slane %v1110_v10, %v5054_v33 }
 0x1e6   :  { %4579 = vmatpush3.xpose.msk.msra.mxu1 %vm2281_vm0, %v1568_v0  ;;  %4582 = vmatprep.mubr.msk.f32.mxu1 %vm2281_vm0, %v924_v31  ;;  %v1059_v45 = vcombine.low %v1040_v19, %v1056_v9  ;;  %v1616_v8 = vrot.slane %v1602_v40, %v5054_v33  ;;  %v1632_v21 = vrot.slane %v1618_v59, %v5054_v33 }
 0x1e7   :  { %4580 = vmatprep.subr.msk.mxu1 %vm2281_vm0, %v1500_v62  ;;  %v1127_v5 = vcombine.low %v1108_v58, %v1124_v60  ;;  %v1060_v11 = vcombine.high %v1040_v19, %v1056_v9  ;;  %v1128_v46 = vcombine.high %v1108_v58, %v1124_v60  ;;  %v5473_v43 = vpop.permute.xlu1 %1709  ;;  %v5895_v1 = vcombine.low %v5035_v63, %v5040_v4 }
 0x1e8   :  { %v1635_v51 = vcombine.low %v1616_v8, %v1632_v21  ;;  %v1636_v20 = vcombine.high %v1616_v8, %v1632_v21  ;;  %v5896_v6 = vcombine.high %v5035_v63, %v5040_v4 }
 0x1e9   :  { %v1813_v2 = vrot.slane %v5895_v1, %v5051_v30 }
 0x1ea   :  { %4581 = vmatpush3.xpose.msk.msra.mxu1 %vm2281_vm0, %v1500_v62  ;;  %v1820_v16 = vrot.slane %v5896_v6, %v5051_v30 }
 0x1eb   :  { %4585 = vmatprep.subr.msk.mxu1 %vm2281_vm0, %v1701_v55  ;;  %v1712_v22 = vpop.permute.xlu1 %1711 }
 0x1ed   :  { %4583 = vmatmul.mubr.msk.f32.vlgmr.msra.gmra.mxu1 %vm2281_vm0, %v992_v37  ;;  %v1728_v42 = vpop.permute.xlu0 %1727 }
 0x1ee   :  { %4586 = vmatpush3.xpose.msk.msra.mxu1 %vm2281_vm0, %v1701_v55  ;;  %4589 = vmatprep.mubr.msk.f32.mxu1 %vm2281_vm0, %v1057_v48  ;;  %v1821_v10 = vcombine.low %v1712_v22, %v1728_v42  ;;  %v1822_v0 = vcombine.high %v1712_v22, %v1728_v42 }
 0x1ef   :  { %4587 = vmatprep.subr.msk.mxu1 %vm2281_vm0, %v1633_v50 }
 0x1f0   :  { %v1829_v52 = vrot.slane %v1821_v10, %v5051_v30  ;;  %v1836_v27 = vrot.slane %v1822_v0, %v5051_v30 }
 0x1f2   :  { %4588 = vmatpush3.xpose.msk.msra.mxu1 %vm2281_vm0, %v1633_v50  ;;  %v1837_v31 = vcombine.low %v1813_v2, %v1829_v52  ;;  %v1838_v37 = vcombine.high %v1813_v2, %v1829_v52  ;;  %v1853_v56 = vcombine.low %v1820_v16, %v1836_v27  ;;  %v1854_v62 = vcombine.high %v1820_v16, %v1836_v27 }
 0x1f3   :  { %4592 = vmatprep.subr.msk.mxu1 %vm2281_vm0, %v1702_v49 }
 0x1f4   :  { %v1845_v18 = vrot.slane %v1837_v31, %v5054_v33  ;;  %v1852_v35 = vrot.slane %v1838_v37, %v5054_v33  ;;  %v1861_v36 = vrot.slane %v1853_v56, %v5054_v33  ;;  %v1868_v41 = vrot.slane %v1854_v62, %v5054_v33  ;;  %v5546_v31 = vpop.f32.mrf.mxu0 }
 0x1f5   :  { %4590 = vmatmul.mubr.msk.f32.vlgmr.msra.gmra.mxu1 %vm2281_vm0, %v1125_v38 }
 0x1f6   :  { %4593 = vmatpush3.xpose.msk.msra.mxu1 %vm2281_vm0, %v1702_v49  ;;  %4596 = vmatprep.mubr.msk.f32.mxu1 %vm2281_vm0, %v1058_v12  ;;  %v2077_v29 = vcombine.low %v1845_v18, %v1852_v35  ;;  %v4431_v55 = vcombine.high %v1845_v18, %v1852_v35  ;;  %v2093_v63 = vcombine.low %v1861_v36, %v1868_v41  ;;  %v5552_v62 = vpop.f32.mrf.mxu0 }
 0x1f7   :  { %4594 = vmatprep.subr.msk.mxu1 %vm2281_vm0, %v1634_v53  ;;  %v4432_v4 = vcombine.high %v1861_v36, %v1868_v41  ;;  %v5563_v41 = vadd.f32 %v5026_v14, %v5029_v15 }
 0x1f8   :  { %v2084_v39 = vrot.slane %v2077_v29, %v5051_v30  ;;  %v2092_v49 = vrot.slane %v4431_v55, %v5051_v30  ;;  %v2100_v26 = vrot.slane %v2093_v63, %v5051_v30  ;;  %v548_v35 = vpop.f32.mrf.mxu0 }
 0x1f9   :  { %v2108_v32 = vrot.slane %v4432_v4, %v5051_v30  ;;  %v5557_v36 = vadd.f32 %v548_v35, %v5024_v13 }
 0x1fa   :  { %4595 = vmatpush3.xpose.msk.msra.mxu1 %vm2281_vm0, %v1634_v53  ;;  %v2109_v28 = vcombine.low %v2084_v39, %v2092_v49  ;;  %v2110_v57 = vcombine.high %v2084_v39, %v2092_v49 }
 0x1fb   :  { %4599 = vmatprep.subr.msk.mxu1 %vm2281_vm0, %v1703_v7  ;;  %v2125_v34 = vcombine.low %v2100_v26, %v2108_v32  ;;  %v2126_v48 = vcombine.high %v2100_v26, %v2108_v32 }
 0x1fc   :  { %v2117_v23 = vrot.slane %v2109_v28, %v5054_v33  ;;  %v2124_v38 = vrot.slane %v2110_v57, %v5054_v33 }
 0x1fd   :  { %4597 = vmatmul.mubr.msk.f32.vlgmr.msra.gmra.mxu1 %vm2281_vm0, %v1126_v3  ;;  %v2133_v24 = vrot.slane %v2125_v34, %v5054_v33  ;;  %v2140_v12 = vrot.slane %v2126_v48, %v5054_v33 }
 0x1fe   :  { %4600 = vmatpush3.xpose.msk.msra.mxu1 %vm2281_vm0, %v1703_v7  ;;  %4603 = vmatprep.mubr.msk.f32.mxu1 %vm2281_vm0, %v1059_v45 }
 0x1ff   :  { %4601 = vmatprep.subr.msk.mxu1 %vm2281_vm0, %v1635_v51  ;;  %v2141_v54 = vcombine.low %v2117_v23, %v2133_v24  ;;  %v2142_v47 = vcombine.high %v2117_v23, %v2133_v24  ;;  %v5499_v44 = vcombine.low %v2124_v38, %v2140_v12  ;;  %v5501_v50 = vcombine.high %v2124_v38, %v2140_v12 }
 0x201   :  { %4620 = vmatprep.subr.mxu0 %v2142_v47 }
 0x202   :  { %4602 = vmatpush3.xpose.msk.msra.mxu1 %vm2281_vm0, %v1635_v51  ;;  %4621 = vmatpush3.msra.mxu0 %v2142_v47 }
 0x203   :  { %4606 = vmatprep.subr.msk.mxu1 %vm2281_vm0, %v1704_v25 }
 0x205   :  { %4604 = vmatmul.mubr.msk.f32.vlgmr.msra.gmra.mxu1 %vm2281_vm0, %v1127_v5 }
 0x206   :  { %4607 = vmatpush3.xpose.msk.msra.mxu1 %vm2281_vm0, %v1704_v25  ;;  %4610 = vmatprep.mubr.msk.f32.mxu1 %vm2281_vm0, %v1060_v11 }
 0x207   :  { %4608 = vmatprep.subr.msk.mxu1 %vm2281_vm0, %v1636_v20 }
 0x20a   :  { %4609 = vmatpush3.xpose.msk.msra.mxu1 %vm2281_vm0, %v1636_v20 }
 0x20b   :  { %4613 = vmatprep.subr.mxu1 %v2141_v54 }
 0x20d   :  { %4611 = vmatmul.mubr.msk.f32.vlgmr.msra.gmra.mxu1 %vm2281_vm0, %v1128_v46 }
 0x20e   :  { %4614 = vmatpush3.msra.mxu1 %v2141_v54 }
 0x295   :  { %v4563_v53 = vpop.f32.mrf.mxu1 }
 0x296   :  { %v2982_v61 = vsel %vm2978_vm1, %v4563_v53, -inf }
 0x297   :  { %2983 = vmax.xlane.f32.xlu0 %v2982_v61  ;;  %v2360_v3 = vpop.f32.mrf.mxu1 }
 0x298   :  { %v2979_v19 = vsel %vm2978_vm1, %v2360_v3, -inf }
 0x29b   :  { %2980 = vmax.xlane.f32.xlu0 %v2979_v19 }
 0x29d   :  { %v4570_v9 = vpop.f32.mrf.mxu1 }
 0x29e   :  { %v2988_v40 = vsel %vm2978_vm1, %v4570_v9, -inf }
 0x29f   :  { %2989 = vmax.xlane.f32.xlu0 %v2988_v40  ;;  %v2447_v59 = vpop.f32.mrf.mxu1 }
 0x2a0   :  { %v2985_v7 = vsel %vm2978_vm1, %v2447_v59, -inf }
 0x2a1   :  { %2986 = vmax.xlane.f32.xlu1 %v2985_v7 }
 0x2a5   :  { %v4577_v25 = vpop.f32.mrf.mxu1 }
 0x2a6   :  { %v2994_v58 = vsel %vm2978_vm1, %v4577_v25, -inf }
 0x2a7   :  { %2995 = vmax.xlane.f32.xlu1 %v2994_v58  ;;  %v5508_v60 = vpop.f32.mrf.mxu1 }
 0x2a8   :  { %v2991_v45 = vsel %vm2978_vm1, %v5508_v60, -inf }
 0x2ab   :  { %2992 = vmax.xlane.f32.xlu1 %v2991_v45 }
 0x2ad   :  { %v5512_v8 = vpop.f32.mrf.mxu1 }
 0x2ae   :  { %v3000_v21 = vsel %vm2978_vm1, %v5512_v8, -inf }
 0x2af   :  { %3001 = vmax.xlane.f32.xlu0 %v3000_v21  ;;  %v5516_v5 = vpop.f32.mrf.mxu1 }
 0x2b0   :  { %v2997_v11 = vsel %vm2978_vm1, %v5516_v5, -inf }
 0x2b3   :  { %2998 = vmax.xlane.f32.xlu0 %v2997_v11 }
 0x2b5   :  { %v5520_v46 = vpop.f32.mrf.mxu1 }
 0x2b6   :  { %v3006_v51 = vsel %vm2978_vm1, %v5520_v46, -inf }
 0x2b7   :  { %3007 = vmax.xlane.f32.xlu1 %v3006_v51  ;;  %v5524_v20 = vpop.f32.mrf.mxu1 }
 0x2b8   :  { %v3003_v22 = vsel %vm2978_vm1, %v5524_v20, -inf }
 0x2bb   :  { %3004 = vmax.xlane.f32.xlu1 %v3003_v22 }
 0x2bd   :  { %v5528_v42 = vpop.f32.mrf.mxu1 }
 0x2be   :  { %v3012_v10 = vsel %vm2978_vm1, %v5528_v42, -inf }
 0x2bf   :  { %3013 = vmax.xlane.f32.xlu0 %v3012_v10  ;;  %v5532_v0 = vpop.f32.mrf.mxu1 }
 0x2c0   :  { %v3009_v1 = vsel %vm2978_vm1, %v5532_v0, -inf }
 0x2c3   :  { %3010 = vmax.xlane.f32.xlu0 %v3009_v1 }
 0x2c5   :  { %v5536_v2 = vpop.f32.mrf.mxu1 }
 0x2c6   :  { %v3018_v6 = vsel %vm2978_vm1, %v5536_v2, -inf }
 0x2c7   :  { %3019 = vmax.xlane.f32.xlu1 %v3018_v6  ;;  %v5540_v16 = vpop.f32.mrf.mxu1 }
 0x2c8   :  { %v3015_v52 = vsel %vm2978_vm1, %v5540_v16, -inf }
 0x2cb   :  { %3016 = vmax.xlane.f32.xlu1 %v3015_v52 }
 0x2cd   :  { %v5544_v27 = vpop.f32.mrf.mxu1 }
 0x2ce   :  { %v3024_v37 = vsel %vm2978_vm1, %v5544_v27, -inf }
 0x2cf   :  { %3025 = vmax.xlane.f32.xlu0 %v3024_v37  ;;  %v5550_v56 = vpop.f32.mrf.mxu1 }
 0x2d0   :  { %v3021_v18 = vsel %vm2978_vm1, %v5550_v56, -inf }
 0x2d3   :  { %3022 = vmax.xlane.f32.xlu0 %v3021_v18 }
 0x2dc   :  { %1715 = vrot.lane.b32.xlu1 %v5557_v36, %s4837_s0 }
 0x2e9   :  { %1725 = vrot.lane.b32.xlu0 %v5563_v41, %s4837_s0 }
 0x320   :  { %v2984_v29 = vpop.xlane.xlu0 %2983 }
 0x321   :  { %v3028_v55 = vsub.f32 %v4563_v53, %v2984_v29 }
 0x323   :  { %v3045_v63 = vmul.f32 1.442695, %v3028_v55 }
 0x324   :  { %v2981_v4 = vpop.xlane.xlu0 %2980 }
 0x325   :  { %4680 = vpow2.f32 %v3045_v63  ;;  %v3027_v39 = vsub.f32 %v2360_v3, %v2981_v4 }
 0x327   :  { %v3043_v49 = vmul.f32 1.442695, %v3027_v39 }
 0x328   :  { %v2990_v26 = vpop.xlane.xlu0 %2989 }
 0x329   :  { %4682 = vpow2.f32 %v3043_v49  ;;  %v3030_v32 = vsub.f32 %v4570_v9, %v2990_v26 }
 0x32a   :  { %v2987_v28 = vpop.xlane.xlu1 %2986 }
 0x32b   :  { %v3049_v34 = vmul.f32 1.442695, %v3030_v32  ;;  %v3029_v23 = vsub.f32 %v2447_v59, %v2987_v28 }
 0x32d   :  { %4684 = vpow2.f32 %v3049_v34  ;;  %v3047_v24 = vmul.f32 1.442695, %v3029_v23 }
 0x32f   :  { %4686 = vpow2.f32 %v3047_v24 }
 0x330   :  { %v2996_v14 = vpop.xlane.xlu1 %2995 }
 0x331   :  { %v3032_v54 = vsub.f32 %v4577_v25, %v2996_v14 }
 0x332   :  { %v5567_v47 = vpop.eup %4680 }
 0x333   :  { %v3053_v57 = vmul.f32 1.442695, %v3032_v54  ;;  %v3078_v48 = vsel %vm2978_vm1, %v5567_v47, 0.0 }
 0x334   :  { %v2993_v38 = vpop.xlane.xlu1 %2992  ;;  %3079 = vadd.xlane.f32.xlu1 %v3078_v48 }
 0x335   :  { %4688 = vpow2.f32 %v3053_v57  ;;  %v3031_v12 = vsub.f32 %v5508_v60, %v2993_v38 }
 0x336   :  { %v5572_v53 = vpop.eup %4682 }
 0x337   :  { %v3051_v61 = vmul.f32 1.442695, %v3031_v12  ;;  %v3075_v3 = vsel %vm2978_vm1, %v5572_v53, 0.0 }
 0x338   :  { %v3002_v19 = vpop.xlane.xlu0 %3001  ;;  %3076 = vadd.xlane.f32.xlu1 %v3075_v3 }
 0x339   :  { %4690 = vpow2.f32 %v3051_v61  ;;  %v3034_v9 = vsub.f32 %v5512_v8, %v3002_v19  ;;  %v1737_v19 = vcombine.low %v5032_v17, %v5563_v41 }
 0x33a   :  { %v5577_v40 = vpop.eup %4684 }
 0x33b   :  { %v3057_v59 = vmul.f32 1.442695, %v3034_v9  ;;  %v3084_v7 = vsel %vm2978_vm1, %v5577_v40, 0.0  ;;  %v1738_v9 = vcombine.high %v5032_v17, %v5563_v41 }
 0x33c   :  { %v5581_v25 = vpop.eup %4686  ;;  %v2999_v58 = vpop.xlane.xlu0 %2998  ;;  %3085 = vadd.xlane.f32.xlu0 %v3084_v7 }
 0x33d   :  { %4692 = vpow2.f32 %v3057_v59  ;;  %v3033_v60 = vsub.f32 %v5516_v5, %v2999_v58  ;;  %v3081_v21 = vsel %vm2978_vm1, %v5581_v25, 0.0 }
 0x33f   :  { %v3055_v45 = vmul.f32 1.442695, %v3033_v60 }
 0x340   :  { %v3008_v11 = vpop.xlane.xlu1 %3007  ;;  %3082 = vadd.xlane.f32.xlu0 %v3081_v21  ;;  %v1752_v21 = vrot.slane %v1738_v9, %v5051_v30 }
 0x341   :  { %4694 = vpow2.f32 %v3055_v45  ;;  %v3036_v8 = vsub.f32 %v5520_v46, %v3008_v11  ;;  %v1745_v45 = vrot.slane %v1737_v19, %v5051_v30 }
 0x342   :  { %v5587_v51 = vpop.eup %4688 }
 0x343   :  { %v3061_v22 = vmul.f32 1.442695, %v3036_v8  ;;  %v3090_v10 = vsel %vm2978_vm1, %v5587_v51, 0.0 }
 0x344   :  { %v3005_v1 = vpop.xlane.xlu1 %3004  ;;  %3091 = vadd.xlane.f32.xlu1 %v3090_v10 }
 0x345   :  { %4696 = vpow2.f32 %v3061_v22  ;;  %v3035_v5 = vsub.f32 %v5524_v20, %v3005_v1 }
 0x346   :  { %v5592_v6 = vpop.eup %4690 }
 0x347   :  { %v3059_v52 = vmul.f32 1.442695, %v3035_v5  ;;  %v3087_v37 = vsel %vm2978_vm1, %v5592_v6, 0.0 }
 0x348   :  { %v3014_v18 = vpop.xlane.xlu0 %3013  ;;  %3088 = vadd.xlane.f32.xlu1 %v3087_v37 }
 0x349   :  { %4698 = vpow2.f32 %v3059_v52  ;;  %v3038_v46 = vsub.f32 %v5528_v42, %v3014_v18 }
 0x34a   :  { %v5597_v35 = vpop.eup %4692 }
 0x34b   :  { %v3065_v29 = vmul.f32 1.442695, %v3038_v46  ;;  %v3096_v55 = vsel %vm2978_vm1, %v5597_v35, 0.0 }
 0x34c   :  { %v3011_v63 = vpop.xlane.xlu0 %3010  ;;  %3097 = vadd.xlane.f32.xlu0 %v3096_v55 }
 0x34d   :  { %4700 = vpow2.f32 %v3065_v29  ;;  %v3037_v20 = vsub.f32 %v5532_v0, %v3011_v63 }
 0x34e   :  { %v5602_v4 = vpop.eup %4694 }
 0x34f   :  { %v3063_v39 = vmul.f32 1.442695, %v3037_v20  ;;  %v3093_v49 = vsel %vm2978_vm1, %v5602_v4, 0.0 }
 0x350   :  { %v3020_v26 = vpop.xlane.xlu1 %3019  ;;  %3094 = vadd.xlane.f32.xlu0 %v3093_v49 }
 0x351   :  { %4702 = vpow2.f32 %v3063_v39  ;;  %v3040_v42 = vsub.f32 %v5536_v2, %v3020_v26 }
 0x352   :  { %v5607_v32 = vpop.eup %4696 }
 0x353   :  { %v3069_v28 = vmul.f32 1.442695, %v3040_v42  ;;  %v3102_v34 = vsel %vm2978_vm1, %v5607_v32, 0.0 }
 0x354   :  { %3103 = vadd.xlane.f32.xlu1 %v3102_v34  ;;  %v3017_v23 = vpop.xlane.xlu1 %3016 }
 0x355   :  { %4704 = vpow2.f32 %v3069_v28  ;;  %v3039_v0 = vsub.f32 %v5540_v16, %v3017_v23 }
 0x356   :  { %v5612_v24 = vpop.eup %4698 }
 0x357   :  { %v3067_v14 = vmul.f32 1.442695, %v3039_v0  ;;  %v3099_v54 = vsel %vm2978_vm1, %v5612_v24, 0.0 }
 0x358   :  { %3100 = vadd.xlane.f32.xlu1 %v3099_v54  ;;  %v3026_v57 = vpop.xlane.xlu0 %3025 }
 0x359   :  { %4706 = vpow2.f32 %v3067_v14  ;;  %v3042_v2 = vsub.f32 %v5544_v27, %v3026_v57 }
 0x35a   :  { %v5617_v48 = vpop.eup %4700 }
 0x35b   :  { %v3073_v38 = vmul.f32 1.442695, %v3042_v2  ;;  %v3108_v12 = vsel %vm2978_vm1, %v5617_v48, 0.0 }
 0x35c   :  { %3109 = vadd.xlane.f32.xlu0 %v3108_v12  ;;  %v3023_v61 = vpop.xlane.xlu0 %3022 }
 0x35d   :  { %4708 = vpow2.f32 %v3073_v38  ;;  %v3041_v16 = vsub.f32 %v5550_v56, %v3023_v61 }
 0x35e   :  { %v5622_v3 = vpop.eup %4702 }
 0x35f   :  { %v3071_v27 = vmul.f32 1.442695, %v3041_v16  ;;  %v3105_v59 = vsel %vm2978_vm1, %v5622_v3, 0.0 }
 0x360   :  { %3106 = vadd.xlane.f32.xlu0 %v3105_v59  ;;  %v1726_v7 = vpop.permute.xlu0 %1725 }
 0x361   :  { %4710 = vpow2.f32 %v3071_v27  ;;  %v1753_v58 = vcombine.low %v5473_v43, %v1726_v7  ;;  %v1754_v60 = vcombine.high %v5473_v43, %v1726_v7  ;;  %v5668_v7 = vadd.f32 %v5546_v31, %v5024_v13 }
 0x362   :  { %v5632_v56 = vpop.eup %4704 }
 0x363   :  { %v1761_v11 = vrot.slane %v1753_v58, %v5051_v30  ;;  %v1768_v17 = vrot.slane %v1754_v60, %v5051_v30  ;;  %v3114_v41 = vsel %vm2978_vm1, %v5632_v56, 0.0  ;;  %v5674_v58 = vadd.f32 %v5552_v62, %v5029_v15  ;;  %v550_v60 = vpop.f32.mrf.mxu0 }
 0x364   :  { %3115 = vadd.xlane.f32.xlu1 %v3114_v41 }
 0x365   :  { %v1769_v8 = vcombine.low %v1745_v45, %v1761_v11  ;;  %v1770_v22 = vcombine.high %v1745_v45, %v1761_v11  ;;  %v1785_v10 = vcombine.low %v1752_v21, %v1768_v17  ;;  %v1786_v1 = vcombine.high %v1752_v21, %v1768_v17  ;;  %v5683_v21 = vpop.permute.xlu1 %1715 }
 0x366   :  { %v5640_v5 = vpop.eup %4706  ;;  %v5679_v45 = vadd.f32 %v550_v60, %v5029_v15 }
 0x367   :  { %v1777_v43 = vrot.slane %v1769_v8, %v5054_v33  ;;  %v1784_v52 = vrot.slane %v1770_v22, %v5054_v33  ;;  %v1793_v37 = vrot.slane %v1785_v10, %v5054_v33  ;;  %v1800_v18 = vrot.slane %v1786_v1, %v5054_v33 }
 0x368   :  { %v3111_v46 = vsel %vm2978_vm1, %v5640_v5, 0.0 }
 0x369   :  { %v2009_v29 = vcombine.low %v1777_v43, %v1784_v52  ;;  %v4429_v55 = vcombine.high %v1777_v43, %v1784_v52  ;;  %v2025_v63 = vcombine.low %v1793_v37, %v1800_v18  ;;  %v4430_v20 = vcombine.high %v1793_v37, %v1800_v18  ;;  %3112 = vadd.xlane.f32.xlu1 %v3111_v46 }
 0x36a   :  { %v5648_v39 = vpop.eup %4708 }
 0x36b   :  { %v3120_v49 = vsel %vm2978_vm1, %v5648_v39, 0.0  ;;  %v2016_v26 = vrot.slane %v2009_v29, %v5051_v30  ;;  %v2024_v42 = vrot.slane %v4429_v55, %v5051_v30  ;;  %v2032_v28 = vrot.slane %v2025_v63, %v5051_v30 }
 0x36c   :  { %3121 = vadd.xlane.f32.xlu0 %v3120_v49  ;;  %v2040_v34 = vrot.slane %v4430_v20, %v5051_v30 }
 0x36d   :  { %v2041_v23 = vcombine.low %v2016_v26, %v2024_v42  ;;  %v2042_v0 = vcombine.high %v2016_v26, %v2024_v42 }
 0x36e   :  { %v5656_v14 = vpop.eup %4710  ;;  %v2057_v54 = vcombine.low %v2032_v28, %v2040_v34  ;;  %v2058_v57 = vcombine.high %v2032_v28, %v2040_v34 }
 0x36f   :  { %v3117_v2 = vsel %vm2978_vm1, %v5656_v14, 0.0  ;;  %v2049_v38 = vrot.slane %v2041_v23, %v5054_v33  ;;  %v2056_v12 = vrot.slane %v2042_v0, %v5054_v33 }
 0x370   :  { %3118 = vadd.xlane.f32.xlu0 %v3117_v2  ;;  %v2065_v61 = vrot.slane %v2057_v54, %v5054_v33  ;;  %v2072_v16 = vrot.slane %v2058_v57, %v5054_v33  ;;  %v1874_v54 = vcombine.high %v5668_v7, %v5674_v58  ;;  %v1941_v2 = vcombine.low %v5557_v36, %v5679_v45 }
 0x372   :  { %v2073_v19 = vcombine.low %v2049_v38, %v2065_v61  ;;  %v2074_v9 = vcombine.high %v2049_v38, %v2065_v61  ;;  %v2075_v27 = vcombine.low %v2056_v12, %v2072_v16  ;;  %v2076_v59 = vcombine.high %v2056_v12, %v2072_v16 }
 0x373   :  { %v1942_v16 = vcombine.high %v5557_v36, %v5679_v45 }
 0x374   :  { %4615 = vmatprep.subr.mxu1 %v2073_v19  ;;  %4622 = vmatprep.subr.mxu0 %v2074_v9 }
 0x375   :  { %4616 = vmatpush3.msra.mxu1 %v2073_v19  ;;  %4623 = vmatpush3.msra.mxu0 %v2074_v9 }
 0x376   :  { %4627 = vmatprep.subr.mxu1 %v5499_v44  ;;  %4634 = vmatprep.subr.mxu0 %v5501_v50 }
 0x37a   :  { %1713 = vrot.lane.b32.xlu1 %v5668_v7, %s4837_s0 }
 0x37e   :  { %1729 = vrot.lane.b32.xlu1 %v5674_v58, %s4837_s0 }
 0x386   :  { %1731 = vrot.lane.b32.xlu0 %v5679_v45, %s4837_s0  ;;  %v1956_v45 = vrot.slane %v1942_v16, %v5051_v30 }
 0x3bd   :  { %v3080_v13 = vpop.xlane.xlu1 %3079 }
 0x3be   :  { %4712 = vrcp.f32 %v3080_v13 }
 0x3c1   :  { %v3077_v31 = vpop.xlane.xlu1 %3076 }
 0x3c2   :  { %4714 = vrcp.f32 %v3077_v31 }
 0x3c5   :  { %v3086_v11 = vpop.xlane.xlu0 %3085 }
 0x3c6   :  { %4716 = vrcp.f32 %v3086_v11 }
 0x3c9   :  { %v3083_v62 = vpop.xlane.xlu0 %3082 }
 0x3ca   :  { %4718 = vrcp.f32 %v3083_v62 }
 0x3cb   :  { %v4713_v41 = vpop.eup %4712 }
 0x3cc   :  { %v3126_v10 = vmul.f32 %v4713_v41, %v5567_v47 }
 0x3cd   :  { %v3092_v17 = vpop.xlane.xlu1 %3091 }
 0x3ce   :  { %4720 = vrcp.f32 %v3092_v17 }
 0x3cf   :  { %v4715_v8 = vpop.eup %4714 }
 0x3d0   :  { %v3124_v22 = vmul.f32 %v4715_v8, %v5572_v53 }
 0x3d1   :  { %v3089_v15 = vpop.xlane.xlu1 %3088 }
 0x3d2   :  { %4722 = vrcp.f32 %v3089_v15  ;;  %4617 = vmatprep.mubr.msk.f32.mxu1 %vm2978_vm1, %v3124_v22 }
 0x3d3   :  { %4618 = vmatmul.mubr.msk.f32.vlgmr.msra.gmra.mxu1 %vm2978_vm1, %v3126_v10  ;;  %v4717_v43 = vpop.eup %4716 }
 0x3d4   :  { %4628 = vmatpush3.msra.mxu1 %v5499_v44  ;;  %v3130_v53 = vmul.f32 %v4717_v43, %v5577_v40 }
 0x3d5   :  { %4629 = vmatprep.subr.mxu1 %v2075_v27  ;;  %v3098_v1 = vpop.xlane.xlu0 %3097 }
 0x3d6   :  { %4630 = vmatpush3.msra.mxu1 %v2075_v27  ;;  %4724 = vrcp.f32 %v3098_v1 }
 0x3d7   :  { %v4719_v52 = vpop.eup %4718 }
 0x3d8   :  { %v3128_v37 = vmul.f32 %v4719_v52, %v5581_v25 }
 0x3d9   :  { %v3095_v18 = vpop.xlane.xlu0 %3094 }
 0x3da   :  { %4726 = vrcp.f32 %v3095_v18  ;;  %4624 = vmatprep.mubr.msk.f32.mxu0 %vm2978_vm1, %v3128_v37 }
 0x3db   :  { %4625 = vmatmul.mubr.msk.f32.vlgmr.msra.gmra.mxu0 %vm2978_vm1, %v3130_v53  ;;  %v4721_v47 = vpop.eup %4720 }
 0x3dc   :  { %4635 = vmatpush3.msra.mxu0 %v5501_v50  ;;  %v3134_v25 = vmul.f32 %v4721_v47, %v5587_v51 }
 0x3dd   :  { %4636 = vmatprep.subr.mxu0 %v2076_v59  ;;  %v3104_v44 = vpop.xlane.xlu1 %3103 }
 0x3de   :  { %4637 = vmatpush3.msra.mxu0 %v2076_v59  ;;  %v1949_v59 = vrot.slane %v1941_v2, %v5051_v30 }
 0x3df   :  { %v4723_v46 = vpop.eup %4722 }
 0x3e0   :  { %v3132_v29 = vmul.f32 %v4723_v46, %v5592_v6 }
 0x3e1   :  { %v3101_v55 = vpop.xlane.xlu1 %3100 }
 0x3e2   :  { %4728 = vrcp.f32 %v3101_v55  ;;  %4631 = vmatprep.mubr.msk.f32.mxu1 %vm2978_vm1, %v3132_v29 }
 0x3e3   :  { %4632 = vmatmul.mubr.msk.f32.vlgmr.msra.gmra.mxu1 %vm2978_vm1, %v3134_v25  ;;  %v4725_v63 = vpop.eup %4724 }
 0x3e4   :  { %v3138_v26 = vmul.f32 %v4725_v63, %v5597_v35 }
 0x3e5   :  { %v3110_v40 = vpop.xlane.xlu0 %3109 }
 0x3e7   :  { %v4727_v20 = vpop.eup %4726 }
 0x3e8   :  { %v3136_v50 = vmul.f32 %v4727_v20, %v5602_v4  ;;  %v1873_v4 = vcombine.low %v5668_v7, %v5674_v58 }
 0x3e9   :  { %v3107_v49 = vpop.xlane.xlu0 %3106 }
 0x3ea   :  { %4730 = vrcp.f32 %v3107_v49  ;;  %4638 = vmatprep.mubr.msk.f32.mxu0 %vm2978_vm1, %v3136_v50  ;;  %v1881_v61 = vrot.slane %v1873_v4, %v5051_v30 }
 0x3eb   :  { %4639 = vmatmul.mubr.msk.f32.vlgmr.msra.gmra.mxu0 %vm2978_vm1, %v3138_v26  ;;  %4732 = vrcp.f32 %v3104_v44 }
 0x3ec   :  { %4734 = vrcp.f32 %v3110_v40 }
 0x3ed   :  { %v3116_v6 = vpop.xlane.xlu1 %3115 }
 0x3ee   :  { %4736 = vrcp.f32 %v3116_v6 }
 0x3ef   :  { %v4729_v51 = vpop.eup %4728 }
 0x3f0   :  { %v3140_v42 = vmul.f32 %v4729_v51, %v5612_v24 }
 0x3f2   :  { %v3113_v28 = vpop.xlane.xlu1 %3112  ;;  %4645 = vmatprep.mubr.msk.f32.mxu1 %vm2978_vm1, %v3140_v42 }
 0x3f3   :  { %4738 = vrcp.f32 %v3113_v28 }
 0x3f5   :  { %v3122_v34 = vpop.xlane.xlu0 %3121 }
 0x3f6   :  { %v1714_v23 = vpop.permute.xlu1 %1713 }
 0x3f7   :  { %v4731_v0 = vpop.eup %4730 }
 0x3f8   :  { %v3144_v35 = vmul.f32 %v4731_v0, %v5622_v3  ;;  %v1888_v3 = vrot.slane %v1874_v54, %v5051_v30  ;;  %v4733_v51 = vpop.eup %4732 }
 0x3f9   :  { %v3119_v57 = vpop.xlane.xlu0 %3118  ;;  %v4735_v4 = vpop.eup %4734 }
 0x3fa   :  { %v1730_v38 = vpop.permute.xlu1 %1729  ;;  %4652 = vmatprep.mubr.msk.f32.mxu0 %vm2978_vm1, %v3144_v35  ;;  %4740 = vrcp.f32 %v3119_v57 }
 0x3fb   :  { %v1889_v24 = vcombine.low %v1714_v23, %v1730_v38  ;;  %v1890_v12 = vcombine.high %v1714_v23, %v1730_v38  ;;  %4742 = vrcp.f32 %v3122_v34  ;;  %v4737_v35 = vpop.eup %4736 }
 0x3fd   :  { %v1897_v19 = vrot.slane %v1889_v24, %v5051_v30  ;;  %v1904_v9 = vrot.slane %v1890_v12, %v5051_v30  ;;  %v1732_v27 = vpop.permute.xlu0 %1731 }
 0x3fe   :  { %v1957_v7 = vcombine.low %v5683_v21, %v1732_v27  ;;  %v1958_v58 = vcombine.high %v5683_v21, %v1732_v27 }
 0x3ff   :  { %v1905_v60 = vcombine.low %v1881_v61, %v1897_v19  ;;  %v1906_v13 = vcombine.high %v1881_v61, %v1897_v19  ;;  %v1921_v31 = vcombine.low %v1888_v3, %v1904_v9  ;;  %v1922_v36 = vcombine.high %v1888_v3, %v1904_v9 }
 0x400   :  { %v1965_v11 = vrot.slane %v1957_v7, %v5051_v30  ;;  %v1972_v62 = vrot.slane %v1958_v58, %v5051_v30  ;;  %v4739_v2 = vpop.eup %4738 }
 0x401   :  { %v1913_v17 = vrot.slane %v1905_v60, %v5054_v33  ;;  %v1920_v41 = vrot.slane %v1906_v13, %v5054_v33  ;;  %v1929_v8 = vrot.slane %v1921_v31, %v5054_v33  ;;  %v1936_v22 = vrot.slane %v1922_v36, %v5054_v33 }
 0x402   :  { %v1973_v21 = vcombine.low %v1949_v59, %v1965_v11  ;;  %v1974_v15 = vcombine.high %v1949_v59, %v1965_v11  ;;  %v1989_v10 = vcombine.low %v1956_v45, %v1972_v62  ;;  %v1990_v1 = vcombine.high %v1956_v45, %v1972_v62 }
 0x403   :  { %v2145_v43 = vcombine.low %v1913_v17, %v1920_v41  ;;  %v4433_v52 = vcombine.high %v1913_v17, %v1920_v41  ;;  %v2161_v37 = vcombine.low %v1929_v8, %v1936_v22  ;;  %v4434_v53 = vcombine.high %v1929_v8, %v1936_v22 }
 0x404   :  { %v1981_v18 = vrot.slane %v1973_v21, %v5054_v33  ;;  %v1988_v44 = vrot.slane %v1974_v15, %v5054_v33  ;;  %v1997_v47 = vrot.slane %v1989_v10, %v5054_v33  ;;  %v2004_v46 = vrot.slane %v1990_v1, %v5054_v33 }
 0x405   :  { %v2152_v29 = vrot.slane %v2145_v43, %v5051_v30  ;;  %v2160_v55 = vrot.slane %v4433_v52, %v5051_v30  ;;  %v2168_v25 = vrot.slane %v2161_v37, %v5051_v30  ;;  %v2176_v40 = vrot.slane %v4434_v53, %v5051_v30 }
 0x406   :  { %v2213_v63 = vcombine.low %v1981_v18, %v1988_v44  ;;  %v4435_v20 = vcombine.high %v1981_v18, %v1988_v44  ;;  %v2229_v50 = vcombine.low %v1997_v47, %v2004_v46  ;;  %v4436_v49 = vcombine.high %v1997_v47, %v2004_v46 }
 0x407   :  { %v2177_v26 = vcombine.low %v2152_v29, %v2160_v55  ;;  %v2193_v6 = vcombine.low %v2168_v25, %v2176_v40  ;;  %v4741_v3 = vpop.eup %4740  ;;  %v2178_v27 = vcombine.high %v2152_v29, %v2160_v55  ;;  %v2194_v59 = vcombine.high %v2168_v25, %v2176_v40 }
 0x408   :  { %v2220_v42 = vrot.slane %v2213_v63, %v5051_v30  ;;  %v2228_v28 = vrot.slane %v4435_v20, %v5051_v30  ;;  %v2236_v23 = vrot.slane %v2229_v50, %v5051_v30  ;;  %v2244_v0 = vrot.slane %v4436_v49, %v5051_v30  ;;  %v4743_v41 = vpop.eup %4742 }
 0x409   :  { %v2185_v61 = vrot.slane %v2177_v26, %v5054_v33  ;;  %v2201_v16 = vrot.slane %v2193_v6, %v5054_v33  ;;  %v3142_v31 = vmul.f32 %v4733_v51, %v5607_v32  ;;  %v3146_v36 = vmul.f32 %v4735_v4, %v5617_v48 }
 0x40a   :  { %v2245_v54 = vcombine.low %v2220_v42, %v2228_v28  ;;  %v2261_v57 = vcombine.low %v2236_v23, %v2244_v0  ;;  %v2246_v38 = vcombine.high %v2220_v42, %v2228_v28  ;;  %v2262_v24 = vcombine.high %v2236_v23, %v2244_v0 }
 0x40b   :  { %v2209_v60 = vcombine.low %v2185_v61, %v2201_v16  ;;  %v2210_v13 = vcombine.high %v2185_v61, %v2201_v16  ;;  %v2192_v45 = vrot.slane %v2178_v27, %v5054_v33  ;;  %v2208_v11 = vrot.slane %v2194_v59, %v5054_v33 }
 0x40c   :  { %v2253_v34 = vrot.slane %v2245_v54, %v5054_v33  ;;  %v2269_v12 = vrot.slane %v2261_v57, %v5054_v33  ;;  %v2260_v7 = vrot.slane %v2246_v38, %v5054_v33  ;;  %v2276_v58 = vrot.slane %v2262_v24, %v5054_v33 }
 0x40d   :  { %v3148_v8 = vmul.f32 %v4739_v2, %v5640_v5  ;;  %v3152_v32 = vmul.f32 %v4741_v3, %v5656_v14  ;;  %v2211_v48 = vcombine.low %v2192_v45, %v2208_v11  ;;  %v2212_v22 = vcombine.high %v2192_v45, %v2208_v11 }
 0x40e   :  { %v2277_v19 = vcombine.low %v2253_v34, %v2269_v12  ;;  %v2278_v9 = vcombine.high %v2253_v34, %v2269_v12  ;;  %v2279_v62 = vcombine.low %v2260_v7, %v2276_v58  ;;  %v2280_v17 = vcombine.high %v2260_v7, %v2276_v58 }
 0x40f   :  { %v3150_v21 = vmul.f32 %v4737_v35, %v5632_v56  ;;  %v3154_v15 = vmul.f32 %v4743_v41, %v5648_v39 }
 0x410   :  { %4641 = vmatprep.subr.mxu1 %v2277_v19  ;;  %4648 = vmatprep.subr.mxu0 %v2278_v9 }
 0x411   :  { %4642 = vmatpush3.msra.mxu1 %v2277_v19  ;;  %4649 = vmatpush3.msra.mxu0 %v2278_v9 }
 0x412   :  { %4643 = vmatprep.subr.mxu1 %v2209_v60  ;;  %4650 = vmatprep.subr.mxu0 %v2210_v13 }
 0x413   :  { %4644 = vmatpush3.msra.mxu1 %v2209_v60  ;;  %4651 = vmatpush3.msra.mxu0 %v2210_v13 }
 0x414   :  { %4646 = vmatmul.mubr.msk.f32.vlgmr.msra.gmra.mxu1 %vm2978_vm1, %v3142_v31  ;;  %4653 = vmatmul.mubr.msk.f32.vlgmr.msra.gmra.mxu0 %vm2978_vm1, %v3146_v36 }
 0x415   :  { %4655 = vmatprep.subr.mxu1 %v2279_v62  ;;  %4662 = vmatprep.subr.mxu0 %v2280_v17 }
 0x416   :  { %4656 = vmatpush3.msra.mxu1 %v2279_v62  ;;  %4659 = vmatprep.mubr.msk.f32.mxu1 %vm2978_vm1, %v3148_v8 }
 0x417   :  { %4663 = vmatpush3.msra.mxu0 %v2280_v17  ;;  %4666 = vmatprep.mubr.msk.f32.mxu0 %vm2978_vm1, %v3152_v32 }
 0x418   :  { %4657 = vmatprep.subr.mxu1 %v2211_v48  ;;  %4664 = vmatprep.subr.mxu0 %v2212_v22 }
 0x419   :  { %4658 = vmatpush3.msra.mxu1 %v2211_v48  ;;  %4665 = vmatpush3.msra.mxu0 %v2212_v22 }
 0x41a   :  { %4660 = vmatmul.mubr.msk.f32.vlgmr.msra.gmra.mxu1 %vm2978_vm1, %v3150_v21  ;;  %4667 = vmatmul.mubr.msk.f32.vlgmr.msra.gmra.mxu0 %vm2978_vm1, %v3154_v15 }
 0x493   :  { %v4619_v5 = vpop.f32.mrf.mxu1 }
 0x495   :  { %v3227_v14 = vpop.f32.mrf.mxu1 }
 0x49b   :  { %v4626_v10 = vpop.f32.mrf.mxu0 }
 0x49d   :  { %v3308_v43 = vpop.f32.mrf.mxu0 }
 0x4a3   :  { %v4633_v1 = vpop.f32.mrf.mxu1 }
 0x4a4   :  { %v3871_v52 = vcombine.low %v4619_v5, %v4633_v1  ;;  %v3872_v37 = vcombine.high %v4619_v5, %v4633_v1 }
 0x4a5   :  { %v3389_v53 = vpop.f32.mrf.mxu1 }
 0x4a6   :  { %v3879_v56 = vrot.slane %v3871_v52, %v5051_v30  ;;  %v3886_v39 = vrot.slane %v3872_v37, %v5051_v30  ;;  %v3803_v46 = vcombine.low %v3227_v14, %v3389_v53  ;;  %v3804_v29 = vcombine.high %v3227_v14, %v3389_v53 }
 0x4a8   :  { %v3811_v51 = vrot.slane %v3803_v46, %v5051_v30  ;;  %v3818_v42 = vrot.slane %v3804_v29, %v5051_v30 }
 0x4ab   :  { %v4640_v18 = vpop.f32.mrf.mxu0 }
 0x4ac   :  { %v3887_v44 = vcombine.low %v4626_v10, %v4640_v18  ;;  %v3888_v47 = vcombine.high %v4626_v10, %v4640_v18 }
 0x4ad   :  { %v3470_v55 = vpop.f32.mrf.mxu0 }
 0x4ae   :  { %v3895_v25 = vrot.slane %v3887_v44, %v5051_v30  ;;  %v3902_v40 = vrot.slane %v3888_v47, %v5051_v30  ;;  %v3819_v63 = vcombine.low %v3308_v43, %v3470_v55  ;;  %v3820_v20 = vcombine.high %v3308_v43, %v3470_v55 }
 0x4b0   :  { %v3903_v50 = vcombine.low %v3879_v56, %v3895_v25  ;;  %v3904_v49 = vcombine.high %v3879_v56, %v3895_v25  ;;  %v3919_v26 = vcombine.low %v3886_v39, %v3902_v40  ;;  %v3920_v6 = vcombine.high %v3886_v39, %v3902_v40 }
 0x4b1   :  { %v3827_v28 = vrot.slane %v3819_v63, %v5051_v30  ;;  %v3834_v23 = vrot.slane %v3820_v20, %v5051_v30 }
 0x4b2   :  { %v3911_v0 = vrot.slane %v3903_v50, %v5054_v33  ;;  %v3918_v4 = vrot.slane %v3904_v49, %v5054_v33  ;;  %v3927_v35 = vrot.slane %v3919_v26, %v5054_v33  ;;  %v3934_v54 = vrot.slane %v3920_v6, %v5054_v33 }
 0x4b3   :  { %v3835_v57 = vcombine.low %v3811_v51, %v3827_v28  ;;  %v3836_v2 = vcombine.high %v3811_v51, %v3827_v28  ;;  %v3851_v38 = vcombine.low %v3818_v42, %v3834_v23  ;;  %v3852_v24 = vcombine.high %v3818_v42, %v3834_v23 }
 0x4b4   :  { %v4143_v34 = vcombine.low %v3911_v0, %v3918_v4  ;;  %v4487_v12 = vcombine.high %v3911_v0, %v3918_v4  ;;  %v4159_v61 = vcombine.low %v3927_v35, %v3934_v54  ;;  %v4488_v16 = vcombine.high %v3927_v35, %v3934_v54 }
 0x4b5   :  { %v3843_v3 = vrot.slane %v3835_v57, %v5054_v33  ;;  %v3850_v19 = vrot.slane %v3836_v2, %v5054_v33  ;;  %v3859_v9 = vrot.slane %v3851_v38, %v5054_v33  ;;  %v3866_v27 = vrot.slane %v3852_v24, %v5054_v33 }
 0x4b6   :  { %v4150_v59 = vrot.slane %v4143_v34, %v5051_v30  ;;  %v4158_v7 = vrot.slane %v4487_v12, %v5051_v30  ;;  %v4166_v58 = vrot.slane %v4159_v61, %v5051_v30  ;;  %v4174_v60 = vrot.slane %v4488_v16, %v5051_v30 }
 0x4b7   :  { %v4075_v13 = vcombine.low %v3843_v3, %v3850_v19  ;;  %v4485_v31 = vcombine.high %v3843_v3, %v3850_v19  ;;  %v4091_v36 = vcombine.low %v3859_v9, %v3866_v27  ;;  %v4486_v45 = vcombine.high %v3859_v9, %v3866_v27 }
 0x4b8   :  { %v4175_v11 = vcombine.low %v4150_v59, %v4158_v7  ;;  %v4191_v62 = vcombine.low %v4166_v58, %v4174_v60  ;;  %v4176_v17 = vcombine.high %v4150_v59, %v4158_v7  ;;  %v4192_v41 = vcombine.high %v4166_v58, %v4174_v60 }
 0x4b9   :  { %v4082_v8 = vrot.slane %v4075_v13, %v5051_v30  ;;  %v4090_v32 = vrot.slane %v4485_v31, %v5051_v30  ;;  %v4098_v48 = vrot.slane %v4091_v36, %v5051_v30  ;;  %v4106_v22 = vrot.slane %v4486_v45, %v5051_v30 }
 0x4ba   :  { %v5786_v21 = vrot.slane %v4175_v11, %v5054_v33  ;;  %v5789_v15 = vrot.slane %v4191_v62, %v5054_v33  ;;  %v5792_v5 = vrot.slane %v4176_v17, %v5054_v33  ;;  %v5795_v14 = vrot.slane %v4192_v41, %v5054_v33 }
 0x4bb   :  { %v4107_v10 = vcombine.low %v4082_v8, %v4090_v32  ;;  %v4123_v1 = vcombine.low %v4098_v48, %v4106_v22  ;;  %v4108_v43 = vcombine.high %v4082_v8, %v4090_v32  ;;  %v4124_v52 = vcombine.high %v4098_v48, %v4106_v22 }
 0x4bc   :  { %v4208_v37 = vcombine.high %v5786_v21, %v5789_v15  ;;  %v4207_v53 = vcombine.low %v5786_v21, %v5789_v15  ;;  %v4209_v18 = vcombine.low %v5792_v5, %v5795_v14  ;;  %v4210_v25 = vcombine.high %v5792_v5, %v5795_v14 }
 0x4bd   :  { %v5804_v44 = vrot.slane %v4107_v10, %v5054_v33  ;;  %v5807_v47 = vrot.slane %v4123_v1, %v5054_v33  ;;  %v5810_v56 = vrot.slane %v4108_v43, %v5054_v33  ;;  %v5813_v39 = vrot.slane %v4124_v52, %v5054_v33 }
 0x4be   :  { %4353 = vrot.lane.b32.xlu1 %v4208_v37, %s4837_s0 }
 0x4bf   :  { %v4140_v46 = vcombine.high %v5804_v44, %v5807_v47  ;;  %v4139_v29 = vcombine.low %v5804_v44, %v5807_v47  ;;  %v4141_v55 = vcombine.low %v5810_v56, %v5813_v39  ;;  %v4142_v40 = vcombine.high %v5810_v56, %v5813_v39 }
 0x4c1   :  { %4351 = vrot.lane.b32.xlu0 %v4140_v46, %s4837_s0 }
 0x4c2   :  { %4369 = vrot.lane.b32.xlu1 %v4210_v25, %s4837_s0 }
 0x4c5   :  { %4367 = vrot.lane.b32.xlu0 %v4142_v40, %s4837_s0 }
 0x4d4   :  { %v4647_v63 = vpop.f32.mrf.mxu1  ;;  %v4654_v20 = vpop.f32.mrf.mxu0 }
 0x4d6   :  { %v3551_v50 = vpop.f32.mrf.mxu1  ;;  %v3632_v49 = vpop.f32.mrf.mxu0 }
 0x4da   :  { %v4661_v26 = vpop.f32.mrf.mxu1  ;;  %v4668_v6 = vpop.f32.mrf.mxu0 }
 0x4db   :  { %v4007_v51 = vcombine.low %v4647_v63, %v4661_v26  ;;  %v4008_v42 = vcombine.high %v4647_v63, %v4661_v26  ;;  %v4023_v28 = vcombine.low %v4654_v20, %v4668_v6  ;;  %v4024_v23 = vcombine.high %v4654_v20, %v4668_v6 }
 0x4dc   :  { %v3713_v0 = vpop.f32.mrf.mxu1  ;;  %v3794_v4 = vpop.f32.mrf.mxu0 }
 0x4dd   :  { %v4015_v35 = vrot.slane %v4007_v51, %v5051_v30  ;;  %v4022_v54 = vrot.slane %v4008_v42, %v5051_v30  ;;  %v4031_v57 = vrot.slane %v4023_v28, %v5051_v30  ;;  %v4038_v2 = vrot.slane %v4024_v23, %v5051_v30 }
 0x4de   :  { %v3939_v38 = vcombine.low %v3551_v50, %v3713_v0  ;;  %v3940_v24 = vcombine.high %v3551_v50, %v3713_v0  ;;  %v3955_v34 = vcombine.low %v3632_v49, %v3794_v4  ;;  %v3956_v12 = vcombine.high %v3632_v49, %v3794_v4 }
 0x4df   :  { %v4039_v61 = vcombine.low %v4015_v35, %v4031_v57  ;;  %v4040_v16 = vcombine.high %v4015_v35, %v4031_v57  ;;  %v4055_v3 = vcombine.low %v4022_v54, %v4038_v2  ;;  %v4056_v19 = vcombine.high %v4022_v54, %v4038_v2 }
 0x4e0   :  { %v3947_v9 = vrot.slane %v3939_v38, %v5051_v30  ;;  %v3954_v27 = vrot.slane %v3940_v24, %v5051_v30  ;;  %v3963_v59 = vrot.slane %v3955_v34, %v5051_v30  ;;  %v3970_v7 = vrot.slane %v3956_v12, %v5051_v30 }
 0x4e1   :  { %v4047_v58 = vrot.slane %v4039_v61, %v5054_v33  ;;  %v4054_v60 = vrot.slane %v4040_v16, %v5054_v33  ;;  %v4063_v13 = vrot.slane %v4055_v3, %v5054_v33  ;;  %v4070_v31 = vrot.slane %v4056_v19, %v5054_v33 }
 0x4e2   :  { %v3971_v36 = vcombine.low %v3947_v9, %v3963_v59  ;;  %v3972_v45 = vcombine.high %v3947_v9, %v3963_v59  ;;  %v3987_v11 = vcombine.low %v3954_v27, %v3970_v7  ;;  %v3988_v62 = vcombine.high %v3954_v27, %v3970_v7 }
 0x4e3   :  { %v4279_v17 = vcombine.low %v4047_v58, %v4054_v60  ;;  %v4491_v41 = vcombine.high %v4047_v58, %v4054_v60  ;;  %v4295_v8 = vcombine.low %v4063_v13, %v4070_v31  ;;  %v4492_v32 = vcombine.high %v4063_v13, %v4070_v31 }
 0x4e4   :  { %v3979_v48 = vrot.slane %v3971_v36, %v5054_v33  ;;  %v3986_v22 = vrot.slane %v3972_v45, %v5054_v33  ;;  %v3995_v10 = vrot.slane %v3987_v11, %v5054_v33  ;;  %v4002_v1 = vrot.slane %v3988_v62, %v5054_v33 }
 0x4e5   :  { %v4286_v43 = vrot.slane %v4279_v17, %v5051_v30  ;;  %v4294_v52 = vrot.slane %v4491_v41, %v5051_v30  ;;  %v4302_v37 = vrot.slane %v4295_v8, %v5051_v30  ;;  %v4310_v46 = vrot.slane %v4492_v32, %v5051_v30 }
 0x4e6   :  { %v4211_v25 = vcombine.low %v3979_v48, %v3986_v22  ;;  %v4489_v40 = vcombine.high %v3979_v48, %v3986_v22  ;;  %v4227_v63 = vcombine.low %v3995_v10, %v4002_v1  ;;  %v4490_v20 = vcombine.high %v3995_v10, %v4002_v1 }
 0x4e7   :  { %v4311_v50 = vcombine.low %v4286_v43, %v4294_v52  ;;  %v4327_v49 = vcombine.low %v4302_v37, %v4310_v46  ;;  %v4312_v26 = vcombine.high %v4286_v43, %v4294_v52  ;;  %v4328_v6 = vcombine.high %v4302_v37, %v4310_v46 }
 0x4e8   :  { %v4218_v51 = vrot.slane %v4211_v25, %v5051_v30  ;;  %v4226_v42 = vrot.slane %v4489_v40, %v5051_v30  ;;  %v4234_v28 = vrot.slane %v4227_v63, %v5051_v30  ;;  %v4242_v23 = vrot.slane %v4490_v20, %v5051_v30 }
 0x4e9   :  { %v4319_v0 = vrot.slane %v4311_v50, %v5054_v33  ;;  %v4335_v4 = vrot.slane %v4327_v49, %v5054_v33  ;;  %v4326_v35 = vrot.slane %v4312_v26, %v5054_v33  ;;  %v4342_v54 = vrot.slane %v4328_v6, %v5054_v33 }
 0x4ea   :  { %v4243_v57 = vcombine.low %v4218_v51, %v4226_v42  ;;  %v4259_v2 = vcombine.low %v4234_v28, %v4242_v23  ;;  %v4244_v38 = vcombine.high %v4218_v51, %v4226_v42  ;;  %v4260_v24 = vcombine.high %v4234_v28, %v4242_v23 }
 0x4eb   :  { %v4344_v34 = vcombine.high %v4319_v0, %v4335_v4  ;;  %v4343_v12 = vcombine.low %v4319_v0, %v4335_v4  ;;  %v4345_v61 = vcombine.low %v4326_v35, %v4342_v54  ;;  %v4346_v7 = vcombine.high %v4326_v35, %v4342_v54 }
 0x4ec   :  { %v4251_v16 = vrot.slane %v4243_v57, %v5054_v33  ;;  %v4267_v3 = vrot.slane %v4259_v2, %v5054_v33  ;;  %v4258_v30 = vrot.slane %v4244_v38, %v5054_v33  ;;  %v4274_v19 = vrot.slane %v4260_v24, %v5054_v33 }
 0x4ed   :  { %4357 = vrot.lane.b32.xlu1 %v4344_v34, %s4837_s0 }
 0x4ee   :  { %v4276_v9 = vcombine.high %v4251_v16, %v4267_v3  ;;  %v4275_v27 = vcombine.low %v4251_v16, %v4267_v3  ;;  %v4277_v59 = vcombine.low %v4258_v30, %v4274_v19  ;;  %v4278_v58 = vcombine.high %v4258_v30, %v4274_v19 }
 0x4f0   :  { %4355 = vrot.lane.b32.xlu0 %v4276_v9, %s4837_s0 }
 0x4f1   :  { %4373 = vrot.lane.b32.xlu1 %v4346_v7, %s4837_s0 }
 0x4f4   :  { %4371 = vrot.lane.b32.xlu0 %v4278_v58, %s4837_s0 }
 0x530   :  { %v4354_v60 = vpop.permute.xlu1 %4353 }
 0x531   :  { %v4380_v13 = vsel %vm2281_vm0, %v4207_v53, %v4354_v60 }
 0x532   :  { %4389 = vst [vmem:[#allocation8 + $0x10] sm:$0xff] %v4380_v13 }
 0x533   :  { %v4352_v33 = vpop.permute.xlu0 %4351 }
 0x534   :  { %v4379_v31 = vsel %vm2281_vm0, %v4139_v29, %v4352_v33  ;;  %v4370_v36 = vpop.permute.xlu1 %4369 }
 0x535   :  { %4387 = vst [vmem:[#allocation8] sm:$0xff] %v4379_v31  ;;  %v4384_v45 = vsel %vm2281_vm0, %v4209_v18, %v4370_v36 }
 0x536   :  { %4390 = vst [vmem:[#allocation8 + $0x18] sm:$0xff] %v4384_v45 }
 0x537   :  { %v4368_v11 = vpop.permute.xlu0 %4367 }
 0x538   :  { %v4383_v21 = vsel %vm2281_vm0, %v4141_v55, %v4368_v11 }
 0x539   :  { %4388 = vst [vmem:[#allocation8 + $0x8] sm:$0xff] %v4383_v21 }
 0x55f   :  { %v4358_v15 = vpop.permute.xlu1 %4357 }
 0x560   :  { %v4382_v53 = vsel %vm2281_vm0, %v4343_v12, %v4358_v15 }
 0x561   :  { %4393 = vst [vmem:[#allocation8 + $0x30] sm:$0xff] %v4382_v53 }
 0x562   :  { %v4356_v44 = vpop.permute.xlu0 %4355 }
 0x563   :  { %v4381_v47 = vsel %vm2281_vm0, %v4275_v27, %v4356_v44  ;;  %v4374_v29 = vpop.permute.xlu1 %4373 }
 0x564   :  { %4391 = vst [vmem:[#allocation8 + $0x20] sm:$0xff] %v4381_v47  ;;  %v4386_v5 = vsel %vm2281_vm0, %v4345_v61, %v4374_v29 }
 0x565   :  { %4394 = vst [vmem:[#allocation8 + $0x38] sm:$0xff] %v4386_v5 }
 0x566   :  { %v4372_v14 = vpop.permute.xlu0 %4371 }
 0x567   :  { %v4385_v18 = vsel %vm2281_vm0, %v4277_v59, %v4372_v14 }
 0x568   :  { %4392 = vst [vmem:[#allocation8 + $0x28] sm:$0xff] %v4385_v18 }
 0x569   :  { %4815 = shalt.err (!%p4812_p5)
}
 0x56a   :  { %4406 = dma.vmem_to_hbm [thread:$0]  %s4401_s30, 1024, %s5894_s3, [#allocation4], %s4834_s22, %s4834_s22, %s4835_s23  }
 0x56b   :  { %4828 = dma.done.wait [#allocation4], 1024  }
 0x56c   :  { %4829 = vsyncadd [#allocation4], 4294966272 }
 0x56d   :  { %4410 = vsyncpa [#allocation3], 1 }
 0x56e   :  { %4411 = vsyncpa [#allocation6], 1 }
 0x56f   :  { %4412 = vsyncpa [#allocation4], 1 }

</bundles_post_ra>
